<compile_context>
chip_gen: v5e
topology: v5e:2x2
jax: 0.10.0
libtpu: 0.0.40
codegen_flags: <defaults>
</compile_context>

<pallas_src>
import jax
import jax.numpy as jnp
from jax.experimental import pallas as pl
from jax.experimental.pallas import tpu as pltpu


# ----------------------------------------------------------------------------
# Pallas kernel factory: fused 3x3 conv (as 9 shifted matmuls) + bias + ReLU.
#
# The flattened-spatial trick: for a conv tap (kh, kw), the needed input value
# for output pixel f = ho*Wq + wo is a *uniform lane shift* of the flattened
# (zero-padded) input plane, so each tap is a contiguous lane slice at a static
# offset d.  Columns wo >= Wo of the computed output are garbage "overhang"
# columns and are stripped in the (cheap) JAX epilogue.
# ----------------------------------------------------------------------------
def _conv3x3_bias_relu_pallas(phases, w9, b, taps, mo):
    """phases: (N, P, Cin, L) bf16   -- P=1 (stride 1) or 4 parity planes (stride 2)
       w9:     (9, Cout, Cin) bf16   -- w9[t] = conv_w[kh, kw].T
       b:      (Cout, 1) f32
       taps:   list of 9 (plane_index, lane_offset) static pairs
       mo:     number of output lanes per image (Ho * Wq, incl. overhang cols)
       returns (N, Cout, mo) f32."""
    N, P, Cin, L = phases.shape
    T, Cout, _ = w9.shape

    def kernel(x_ref, w_ref, b_ref, o_ref):
        acc = None
        # Static unroll over the 9 taps: each tap is one small MXU matmul
        # (Cout, Cin) @ (Cin, mo) accumulated in f32.
        for t, (p, d) in enumerate(taps):
            xs = x_ref[0, p, :, pl.ds(d, mo)]                      # (Cin, mo) bf16
            part = jnp.dot(w_ref[t], xs, preferred_element_type=jnp.float32)
            acc = part if acc is None else acc + part
        acc = acc + b_ref[...]                                     # (Cout, 1) bcast
        o_ref[0] = jnp.maximum(acc, 0.0).astype(o_ref.dtype)       # lane-dense store

    flops = 2 * N * len(taps) * Cout * Cin * mo
    bytes_accessed = (
        phases.size * phases.dtype.itemsize
        + w9.size * w9.dtype.itemsize
        + b.size * 4
        + N * Cout * mo * 4
    )

    return pl.pallas_call(
        kernel,
        out_shape=jax.ShapeDtypeStruct((N, Cout, mo), jnp.float32),
        grid_spec=pltpu.PrefetchScalarGridSpec(
            num_scalar_prefetch=0,
            grid=(N,),  # one image per step; N=2 -> even parallel split on v7x
            in_specs=[
                pl.BlockSpec((1, P, Cin, L), lambda n: (n, 0, 0, 0)),
                # Constant block index -> weights/bias DMA'd once, then revisited.
                pl.BlockSpec((T, Cout, Cin), lambda n: (0, 0, 0)),
                pl.BlockSpec((Cout, 1), lambda n: (0, 0)),
            ],
            out_specs=pl.BlockSpec((1, Cout, mo), lambda n: (n, 0, 0)),
        ),
        compiler_params=pltpu.CompilerParams(
            dimension_semantics=("parallel",),
        ),
        cost_estimate=pl.CostEstimate(
            flops=flops, transcendentals=0, bytes_accessed=bytes_accessed
        ),
    )(phases, w9, b)


# ----------------------------------------------------------------------------
# JAX-side prep (pure zero-pad / parity-split glue, ~1x the activation size).
# ----------------------------------------------------------------------------
def _prep_stride1(x_nchw):
    """Flatten the padded image so every conv tap is a uniform lane shift."""
    N, C, H, W = x_nchw.shape
    Wq = W + 2                                   # compute width (incl. overhang)
    # 1 row pad top, 1 row pad bottom + 1 slack row, 1 col pad each side.
    xp = jnp.pad(x_nchw, ((0, 0), (0, 0), (1, 2), (1, 1)))        # (N,C,H+3,Wq)
    flat = xp.reshape(N, C, (H + 3) * Wq)[:, None]                # (N,1,C,L)
    taps = [(0, kh * Wq + kw) for kh in range(3) for kw in range(3)]
    return flat.astype(jnp.bfloat16), taps, H, W, Wq


def _prep_stride2(x_nchw):
    """Parity-split the padded image into 4 planes; stride-2 taps become
    uniform lane shifts of a single plane.  No activation expansion."""
    N, C, H, W = x_nchw.shape
    Ho, Wo = H // 2, W // 2
    Wq = Wo + 1                                  # compute width (incl. overhang)
    xp = jnp.pad(x_nchw, ((0, 0), (0, 0), (1, 1), (1, 1)))        # (N,C,H+2,W+2)
    planes = []
    for ph in range(2):
        for pw in range(2):
            q = xp[:, :, ph::2, pw::2]                            # (N,C,Ho+1,Wq)
            q = jnp.pad(q, ((0, 0), (0, 0), (0, 1), (0, 0)))      # + slack row
            planes.append(q.reshape(N, C, (Ho + 2) * Wq))
    phases = jnp.stack(planes, axis=1)                            # (N,4,C,Lq)
    taps = []
    for kh in range(3):
        for kw in range(3):
            p = (kh % 2) * 2 + (kw % 2)          # which parity plane
            d = (kh // 2) * Wq + (kw // 2)       # lane offset within the plane
            taps.append((p, d))
    return phases.astype(jnp.bfloat16), taps, Ho, Wo, Wq


def conv3x3_relu(x_nchw, w_hwio, b, stride):
    """3x3 conv (pad=1) + bias + ReLU in NCHW, hot path in Pallas.

    x_nchw: (N, Cin, H, W) f32; w_hwio: (3, 3, Cin, Cout); b: (Cout,)."""
    N, Cin, H, W = x_nchw.shape
    Cout = w_hwio.shape[-1]
    if stride == 1:
        phases, taps, Ho, Wo, Wq = _prep_stride1(x_nchw)
    else:
        phases, taps, Ho, Wo, Wq = _prep_stride2(x_nchw)
    mo = Ho * Wq

    w9 = jnp.transpose(w_hwio, (0, 1, 3, 2)).reshape(9, Cout, Cin)
    w9 = w9.astype(jnp.bfloat16)
    b2 = b.astype(jnp.float32).reshape(Cout, 1)

    out = _conv3x3_bias_relu_pallas(phases, w9, b2, taps, mo)     # (N,Cout,mo)
    # Strip the overhang columns; output is already NCHW (no transpose needed).
    return out.reshape(N, Cout, Ho, Wq)[:, :, :, :Wo]


# ----------------------------------------------------------------------------
# GeneralizedRCNN_G: forward(images) -> backbone features (tuple of levels).
# ----------------------------------------------------------------------------
def init_backbone_params(key, c_in=4):
    k1, k2, k3, k4, k5, k6 = jax.random.split(key, 6)
    return {
        "w1": 0.1 * jax.random.normal(k1, (3, 3, c_in, 8), jnp.float32),
        "b1": 0.01 * jax.random.normal(k4, (8,), jnp.float32),
        "w2": 0.1 * jax.random.normal(k2, (3, 3, 8, 16), jnp.float32),
        "b2": 0.01 * jax.random.normal(k5, (16,), jnp.float32),
        "w3": 0.1 * jax.random.normal(k3, (3, 3, 16, 32), jnp.float32),
        "b3": 0.01 * jax.random.normal(k6, (32,), jnp.float32),
    }


@jax.jit
def generalized_rcnn_g_forward(images_nchw, params):
    """Equivalent of GeneralizedRCNN_G.forward: features = backbone(images.tensors).

    images_nchw: (N, C, H, W) float32 (PyTorch layout).
    Returns a tuple of NCHW feature maps, one per backbone level (FPN-style)."""
    # to_image_list(images) on an already-batched tensor is an identity wrap.
    f1 = conv3x3_relu(images_nchw, params["w1"], params["b1"], stride=1)  # (N,8,H,W)
    f2 = conv3x3_relu(f1, params["w2"], params["b2"], stride=2)           # (N,16,H/2,W/2)
    f3 = conv3x3_relu(f2, params["w3"], params["b3"], stride=2)           # (N,32,H/4,W/4)
    # TODO(synk): fuse stages 2+3 into one pallas_call keeping f2 resident in
    # VMEM; at these channel counts the HBM round trip is tiny, but fusing
    # would also remove two pipeline-ramp costs.
    return (f1, f2, f3)


# ----------------------------------------------------------------------------
# Pure-XLA f32 reference (for a loose numerical sanity check of the bf16 path).
# ----------------------------------------------------------------------------
def _reference_forward(images, params):
    def conv(x, w, b, stride):
        y = jax.lax.conv_general_dilated(
            x, w, window_strides=(stride, stride), padding=((1, 1), (1, 1)),
            dimension_numbers=("NCHW", "HWIO", "NCHW"))
        return jnp.maximum(y + b[None, :, None, None], 0.0)

    f1 = conv(images, params["w1"], params["b1"], 1)
    f2 = conv(f1, params["w2"], params["b2"], 2)
    f3 = conv(f2, params["w3"], params["b3"], 2)
    return (f1, f2, f3)


if __name__ == "__main__":
    key = jax.random.PRNGKey(0)
    k_img, k_par = jax.random.split(key)

    # Small NCHW input consistent with the module: batch=2, channels=4, 16x16.
    images = jax.random.normal(k_img, (2, 4, 16, 16), jnp.float32)
    params = init_backbone_params(k_par, c_in=4)

    features = generalized_rcnn_g_forward(images, params)
    features = jax.block_until_ready(features)

    assert features[0].shape == (2, 8, 16, 16)
    assert features[1].shape == (2, 16, 8, 8)
    assert features[2].shape == (2, 32, 4, 4)

    # Sanity check vs. the f32 XLA reference (kernel path uses bf16 on the MXU,
    # hence the loose tolerances).
    ref = _reference_forward(images, params)
    for got, want in zip(features, ref):
        assert jnp.allclose(got, want, rtol=5e-2, atol=5e-2), float(
            jnp.max(jnp.abs(got - want)))

    print("KERNEL_OK")
</pallas_src>

<mosaic_0001>
module attributes {stable_mosaic.version = 11 : i64} {
  func.func @kernel(%arg0: i32, %arg1: memref<1x1x4x342xbf16, #tpu.memory_space<vmem>>, %arg2: memref<9x8x4xbf16, #tpu.memory_space<vmem>>, %arg3: memref<8x1xf32, #tpu.memory_space<vmem>>, %arg4: memref<1x8x288xf32, #tpu.memory_space<vmem>>) attributes {dimension_semantics = [#tpu.dimension_semantics<parallel>], iteration_bounds = array<i64: 2>, scalar_prefetch = 0 : i64, scratch_operands = 0 : i64, tpu.core_type = #tpu.core_type<tc>, window_params = [{transform_indices = @transform_0, window_bounds = array<i64: 1, 1, 4, 342>}, {pipeline_mode = #tpu.pipeline_mode<synchronous>, transform_indices = @transform_1, window_bounds = array<i64: 9, 8, 4>}, {pipeline_mode = #tpu.pipeline_mode<synchronous>, transform_indices = @transform_2, window_bounds = array<i64: 8, 1>}, {transform_indices = @transform_3, window_bounds = array<i64: 1, 8, 288>}]} {
    %c0 = arith.constant 0 : index
    %c0_0 = arith.constant 0 : index
    %c0_1 = arith.constant 0 : index
    %c0_2 = arith.constant 0 : index
    %0 = vector.load %arg1[%c0, %c0_0, %c0_1, %c0_2] : memref<1x1x4x342xbf16, #tpu.memory_space<vmem>>, vector<1x1x4x288xbf16>
    %1 = vector.shape_cast %0 : vector<1x1x4x288xbf16> to vector<4x288xbf16>
    %c0_3 = arith.constant 0 : index
    %c0_4 = arith.constant 0 : index
    %c0_5 = arith.constant 0 : index
    %2 = vector.load %arg2[%c0_3, %c0_4, %c0_5] : memref<9x8x4xbf16, #tpu.memory_space<vmem>>, vector<1x8x4xbf16>
    %3 = vector.shape_cast %2 : vector<1x8x4xbf16> to vector<8x4xbf16>
    %cst = arith.constant dense<0.000000e+00> : vector<8x288xf32>
    %4 = tpu.matmul %3, %1, %cst {dimension_numbers = #tpu.dot_dimension_numbers<[1], [0], [0], [1], [0, 0, 1, 1], [], []>} : vector<8x4xbf16>, vector<4x288xbf16>, vector<8x288xf32> -> vector<8x288xf32>
    %c0_6 = arith.constant 0 : index
    %c0_7 = arith.constant 0 : index
    %c0_8 = arith.constant 0 : index
    %c1 = arith.constant 1 : index
    %5 = vector.load %arg1[%c0_6, %c0_7, %c0_8, %c1] : memref<1x1x4x342xbf16, #tpu.memory_space<vmem>>, vector<1x1x4x288xbf16>
    %6 = vector.shape_cast %5 : vector<1x1x4x288xbf16> to vector<4x288xbf16>
    %c1_9 = arith.constant 1 : index
    %c0_10 = arith.constant 0 : index
    %c0_11 = arith.constant 0 : index
    %7 = vector.load %arg2[%c1_9, %c0_10, %c0_11] : memref<9x8x4xbf16, #tpu.memory_space<vmem>>, vector<1x8x4xbf16>
    %8 = vector.shape_cast %7 : vector<1x8x4xbf16> to vector<8x4xbf16>
    %cst_12 = arith.constant dense<0.000000e+00> : vector<8x288xf32>
    %9 = tpu.matmul %8, %6, %cst_12 {dimension_numbers = #tpu.dot_dimension_numbers<[1], [0], [0], [1], [0, 0, 1, 1], [], []>} : vector<8x4xbf16>, vector<4x288xbf16>, vector<8x288xf32> -> vector<8x288xf32>
    %10 = arith.addf %4, %9 : vector<8x288xf32>
    %c0_13 = arith.constant 0 : index
    %c0_14 = arith.constant 0 : index
    %c0_15 = arith.constant 0 : index
    %c2 = arith.constant 2 : index
    %11 = vector.load %arg1[%c0_13, %c0_14, %c0_15, %c2] : memref<1x1x4x342xbf16, #tpu.memory_space<vmem>>, vector<1x1x4x288xbf16>
    %12 = vector.shape_cast %11 : vector<1x1x4x288xbf16> to vector<4x288xbf16>
    %c2_16 = arith.constant 2 : index
    %c0_17 = arith.constant 0 : index
    %c0_18 = arith.constant 0 : index
    %13 = vector.load %arg2[%c2_16, %c0_17, %c0_18] : memref<9x8x4xbf16, #tpu.memory_space<vmem>>, vector<1x8x4xbf16>
    %14 = vector.shape_cast %13 : vector<1x8x4xbf16> to vector<8x4xbf16>
    %cst_19 = arith.constant dense<0.000000e+00> : vector<8x288xf32>
    %15 = tpu.matmul %14, %12, %cst_19 {dimension_numbers = #tpu.dot_dimension_numbers<[1], [0], [0], [1], [0, 0, 1, 1], [], []>} : vector<8x4xbf16>, vector<4x288xbf16>, vector<8x288xf32> -> vector<8x288xf32>
    %16 = arith.addf %10, %15 : vector<8x288xf32>
    %c0_20 = arith.constant 0 : index
    %c0_21 = arith.constant 0 : index
    %c0_22 = arith.constant 0 : index
    %c18 = arith.constant 18 : index
    %17 = vector.load %arg1[%c0_20, %c0_21, %c0_22, %c18] : memref<1x1x4x342xbf16, #tpu.memory_space<vmem>>, vector<1x1x4x288xbf16>
    %18 = vector.shape_cast %17 : vector<1x1x4x288xbf16> to vector<4x288xbf16>
    %c3 = arith.constant 3 : index
    %c0_23 = arith.constant 0 : index
    %c0_24 = arith.constant 0 : index
    %19 = vector.load %arg2[%c3, %c0_23, %c0_24] : memref<9x8x4xbf16, #tpu.memory_space<vmem>>, vector<1x8x4xbf16>
    %20 = vector.shape_cast %19 : vector<1x8x4xbf16> to vector<8x4xbf16>
    %cst_25 = arith.constant dense<0.000000e+00> : vector<8x288xf32>
    %21 = tpu.matmul %20, %18, %cst_25 {dimension_numbers = #tpu.dot_dimension_numbers<[1], [0], [0], [1], [0, 0, 1, 1], [], []>} : vector<8x4xbf16>, vector<4x288xbf16>, vector<8x288xf32> -> vector<8x288xf32>
    %22 = arith.addf %16, %21 : vector<8x288xf32>
    %c0_26 = arith.constant 0 : index
    %c0_27 = arith.constant 0 : index
    %c0_28 = arith.constant 0 : index
    %c19 = arith.constant 19 : index
    %23 = vector.load %arg1[%c0_26, %c0_27, %c0_28, %c19] : memref<1x1x4x342xbf16, #tpu.memory_space<vmem>>, vector<1x1x4x288xbf16>
    %24 = vector.shape_cast %23 : vector<1x1x4x288xbf16> to vector<4x288xbf16>
    %c4 = arith.constant 4 : index
    %c0_29 = arith.constant 0 : index
    %c0_30 = arith.constant 0 : index
    %25 = vector.load %arg2[%c4, %c0_29, %c0_30] : memref<9x8x4xbf16, #tpu.memory_space<vmem>>, vector<1x8x4xbf16>
    %26 = vector.shape_cast %25 : vector<1x8x4xbf16> to vector<8x4xbf16>
    %cst_31 = arith.constant dense<0.000000e+00> : vector<8x288xf32>
    %27 = tpu.matmul %26, %24, %cst_31 {dimension_numbers = #tpu.dot_dimension_numbers<[1], [0], [0], [1], [0, 0, 1, 1], [], []>} : vector<8x4xbf16>, vector<4x288xbf16>, vector<8x288xf32> -> vector<8x288xf32>
    %28 = arith.addf %22, %27 : vector<8x288xf32>
    %c0_32 = arith.constant 0 : index
    %c0_33 = arith.constant 0 : index
    %c0_34 = arith.constant 0 : index
    %c20 = arith.constant 20 : index
    %29 = vector.load %arg1[%c0_32, %c0_33, %c0_34, %c20] : memref<1x1x4x342xbf16, #tpu.memory_space<vmem>>, vector<1x1x4x288xbf16>
    %30 = vector.shape_cast %29 : vector<1x1x4x288xbf16> to vector<4x288xbf16>
    %c5 = arith.constant 5 : index
    %c0_35 = arith.constant 0 : index
    %c0_36 = arith.constant 0 : index
    %31 = vector.load %arg2[%c5, %c0_35, %c0_36] : memref<9x8x4xbf16, #tpu.memory_space<vmem>>, vector<1x8x4xbf16>
    %32 = vector.shape_cast %31 : vector<1x8x4xbf16> to vector<8x4xbf16>
    %cst_37 = arith.constant dense<0.000000e+00> : vector<8x288xf32>
    %33 = tpu.matmul %32, %30, %cst_37 {dimension_numbers = #tpu.dot_dimension_numbers<[1], [0], [0], [1], [0, 0, 1, 1], [], []>} : vector<8x4xbf16>, vector<4x288xbf16>, vector<8x288xf32> -> vector<8x288xf32>
    %34 = arith.addf %28, %33 : vector<8x288xf32>
    %c0_38 = arith.constant 0 : index
    %c0_39 = arith.constant 0 : index
    %c0_40 = arith.constant 0 : index
    %c36 = arith.constant 36 : index
    %35 = vector.load %arg1[%c0_38, %c0_39, %c0_40, %c36] : memref<1x1x4x342xbf16, #tpu.memory_space<vmem>>, vector<1x1x4x288xbf16>
    %36 = vector.shape_cast %35 : vector<1x1x4x288xbf16> to vector<4x288xbf16>
    %c6 = arith.constant 6 : index
    %c0_41 = arith.constant 0 : index
    %c0_42 = arith.constant 0 : index
    %37 = vector.load %arg2[%c6, %c0_41, %c0_42] : memref<9x8x4xbf16, #tpu.memory_space<vmem>>, vector<1x8x4xbf16>
    %38 = vector.shape_cast %37 : vector<1x8x4xbf16> to vector<8x4xbf16>
    %cst_43 = arith.constant dense<0.000000e+00> : vector<8x288xf32>
    %39 = tpu.matmul %38, %36, %cst_43 {dimension_numbers = #tpu.dot_dimension_numbers<[1], [0], [0], [1], [0, 0, 1, 1], [], []>} : vector<8x4xbf16>, vector<4x288xbf16>, vector<8x288xf32> -> vector<8x288xf32>
    %40 = arith.addf %34, %39 : vector<8x288xf32>
    %c0_44 = arith.constant 0 : index
    %c0_45 = arith.constant 0 : index
    %c0_46 = arith.constant 0 : index
    %c37 = arith.constant 37 : index
    %41 = vector.load %arg1[%c0_44, %c0_45, %c0_46, %c37] : memref<1x1x4x342xbf16, #tpu.memory_space<vmem>>, vector<1x1x4x288xbf16>
    %42 = vector.shape_cast %41 : vector<1x1x4x288xbf16> to vector<4x288xbf16>
    %c7 = arith.constant 7 : index
    %c0_47 = arith.constant 0 : index
    %c0_48 = arith.constant 0 : index
    %43 = vector.load %arg2[%c7, %c0_47, %c0_48] : memref<9x8x4xbf16, #tpu.memory_space<vmem>>, vector<1x8x4xbf16>
    %44 = vector.shape_cast %43 : vector<1x8x4xbf16> to vector<8x4xbf16>
    %cst_49 = arith.constant dense<0.000000e+00> : vector<8x288xf32>
    %45 = tpu.matmul %44, %42, %cst_49 {dimension_numbers = #tpu.dot_dimension_numbers<[1], [0], [0], [1], [0, 0, 1, 1], [], []>} : vector<8x4xbf16>, vector<4x288xbf16>, vector<8x288xf32> -> vector<8x288xf32>
    %46 = arith.addf %40, %45 : vector<8x288xf32>
    %c0_50 = arith.constant 0 : index
    %c0_51 = arith.constant 0 : index
    %c0_52 = arith.constant 0 : index
    %c38 = arith.constant 38 : index
    %47 = vector.load %arg1[%c0_50, %c0_51, %c0_52, %c38] : memref<1x1x4x342xbf16, #tpu.memory_space<vmem>>, vector<1x1x4x288xbf16>
    %48 = vector.shape_cast %47 : vector<1x1x4x288xbf16> to vector<4x288xbf16>
    %c8 = arith.constant 8 : index
    %c0_53 = arith.constant 0 : index
    %c0_54 = arith.constant 0 : index
    %49 = vector.load %arg2[%c8, %c0_53, %c0_54] : memref<9x8x4xbf16, #tpu.memory_space<vmem>>, vector<1x8x4xbf16>
    %50 = vector.shape_cast %49 : vector<1x8x4xbf16> to vector<8x4xbf16>
    %cst_55 = arith.constant dense<0.000000e+00> : vector<8x288xf32>
    %51 = tpu.matmul %50, %48, %cst_55 {dimension_numbers = #tpu.dot_dimension_numbers<[1], [0], [0], [1], [0, 0, 1, 1], [], []>} : vector<8x4xbf16>, vector<4x288xbf16>, vector<8x288xf32> -> vector<8x288xf32>
    %52 = arith.addf %46, %51 : vector<8x288xf32>
    %c0_56 = arith.constant 0 : index
    %c0_57 = arith.constant 0 : index
    %53 = vector.load %arg3[%c0_56, %c0_57] : memref<8x1xf32, #tpu.memory_space<vmem>>, vector<8x1xf32>
    %54 = vector.broadcast %53 : vector<8x1xf32> to vector<8x288xf32>
    %55 = arith.addf %52, %54 : vector<8x288xf32>
    %cst_58 = arith.constant 0.000000e+00 : f32
    %56 = vector.broadcast %cst_58 : f32 to vector<8x288xf32>
    %57 = arith.maximumf %55, %56 : vector<8x288xf32>
    %c0_59 = arith.constant 0 : index
    %c0_60 = arith.constant 0 : index
    %c0_61 = arith.constant 0 : index
    %58 = vector.load %arg4[%c0_59, %c0_60, %c0_61] : memref<1x8x288xf32, #tpu.memory_space<vmem>>, vector<1x8x288xf32>
    %59 = vector.shape_cast %58 : vector<1x8x288xf32> to vector<8x288xf32>
    %60 = vector.shape_cast %57 : vector<8x288xf32> to vector<1x8x288xf32>
    tpu.vector_store %arg4[%c0_59, %c0_60, %c0_61], %60 {strides = array<i32>} : memref<1x8x288xf32, #tpu.memory_space<vmem>>, vector<1x8x288xf32>,
    return
  }
  func.func @transform_0(%arg0: i32) -> (i32, i32, i32, i32) {
    %c0_i32 = arith.constant 0 : i32
    %c0_i32_0 = arith.constant 0 : i32
    %c0_i32_1 = arith.constant 0 : i32
    %c0_i32_2 = arith.constant 0 : i32
    return %arg0, %c0_i32, %c0_i32_0, %c0_i32_1 : i32, i32, i32, i32
  }
  func.func @transform_1(%arg0: i32) -> (i32, i32, i32) {
    %c0_i32 = arith.constant 0 : i32
    %c0_i32_0 = arith.constant 0 : i32
    %c0_i32_1 = arith.constant 0 : i32
    %c0_i32_2 = arith.constant 0 : i32
    return %c0_i32, %c0_i32_0, %c0_i32_1 : i32, i32, i32
  }
  func.func @transform_2(%arg0: i32) -> (i32, i32) {
    %c0_i32 = arith.constant 0 : i32
    %c0_i32_0 = arith.constant 0 : i32
    %c0_i32_1 = arith.constant 0 : i32
    return %c0_i32, %c0_i32_0 : i32, i32
  }
  func.func @transform_3(%arg0: i32) -> (i32, i32, i32) {
    %c0_i32 = arith.constant 0 : i32
    %c0_i32_0 = arith.constant 0 : i32
    %c0_i32_1 = arith.constant 0 : i32
    return %arg0, %c0_i32, %c0_i32_0 : i32, i32, i32
  }
}

module attributes {stable_mosaic.version = 11 : i64} {
  func.func @kernel(%arg0: i32, %arg1: memref<1x4x8x90xbf16, #tpu.memory_space<vmem>>, %arg2: memref<9x16x8xbf16, #tpu.memory_space<vmem>>, %arg3: memref<16x1xf32, #tpu.memory_space<vmem>>, %arg4: memref<1x16x72xf32, #tpu.memory_space<vmem>>) attributes {dimension_semantics = [#tpu.dimension_semantics<parallel>], iteration_bounds = array<i64: 2>, scalar_prefetch = 0 : i64, scratch_operands = 0 : i64, tpu.core_type = #tpu.core_type<tc>, window_params = [{transform_indices = @transform_0, window_bounds = array<i64: 1, 4, 8, 90>}, {pipeline_mode = #tpu.pipeline_mode<synchronous>, transform_indices = @transform_1, window_bounds = array<i64: 9, 16, 8>}, {pipeline_mode = #tpu.pipeline_mode<synchronous>, transform_indices = @transform_2, window_bounds = array<i64: 16, 1>}, {transform_indices = @transform_3, window_bounds = array<i64: 1, 16, 72>}]} {
    %c0 = arith.constant 0 : index
    %c0_0 = arith.constant 0 : index
    %c0_1 = arith.constant 0 : index
    %c0_2 = arith.constant 0 : index
    %0 = vector.load %arg1[%c0, %c0_0, %c0_1, %c0_2] : memref<1x4x8x90xbf16, #tpu.memory_space<vmem>>, vector<1x1x8x72xbf16>
    %1 = vector.shape_cast %0 : vector<1x1x8x72xbf16> to vector<8x72xbf16>
    %c0_3 = arith.constant 0 : index
    %c0_4 = arith.constant 0 : index
    %c0_5 = arith.constant 0 : index
    %2 = vector.load %arg2[%c0_3, %c0_4, %c0_5] : memref<9x16x8xbf16, #tpu.memory_space<vmem>>, vector<1x16x8xbf16>
    %3 = vector.shape_cast %2 : vector<1x16x8xbf16> to vector<16x8xbf16>
    %cst = arith.constant dense<0.000000e+00> : vector<16x72xf32>
    %4 = tpu.matmul %3, %1, %cst {dimension_numbers = #tpu.dot_dimension_numbers<[1], [0], [0], [1], [0, 0, 1, 1], [], []>} : vector<16x8xbf16>, vector<8x72xbf16>, vector<16x72xf32> -> vector<16x72xf32>
    %c0_6 = arith.constant 0 : index
    %c1 = arith.constant 1 : index
    %c0_7 = arith.constant 0 : index
    %c0_8 = arith.constant 0 : index
    %5 = vector.load %arg1[%c0_6, %c1, %c0_7, %c0_8] : memref<1x4x8x90xbf16, #tpu.memory_space<vmem>>, vector<1x1x8x72xbf16>
    %6 = vector.shape_cast %5 : vector<1x1x8x72xbf16> to vector<8x72xbf16>
    %c1_9 = arith.constant 1 : index
    %c0_10 = arith.constant 0 : index
    %c0_11 = arith.constant 0 : index
    %7 = vector.load %arg2[%c1_9, %c0_10, %c0_11] : memref<9x16x8xbf16, #tpu.memory_space<vmem>>, vector<1x16x8xbf16>
    %8 = vector.shape_cast %7 : vector<1x16x8xbf16> to vector<16x8xbf16>
    %cst_12 = arith.constant dense<0.000000e+00> : vector<16x72xf32>
    %9 = tpu.matmul %8, %6, %cst_12 {dimension_numbers = #tpu.dot_dimension_numbers<[1], [0], [0], [1], [0, 0, 1, 1], [], []>} : vector<16x8xbf16>, vector<8x72xbf16>, vector<16x72xf32> -> vector<16x72xf32>
    %10 = arith.addf %4, %9 : vector<16x72xf32>
    %c0_13 = arith.constant 0 : index
    %c0_14 = arith.constant 0 : index
    %c0_15 = arith.constant 0 : index
    %c1_16 = arith.constant 1 : index
    %11 = vector.load %arg1[%c0_13, %c0_14, %c0_15, %c1_16] : memref<1x4x8x90xbf16, #tpu.memory_space<vmem>>, vector<1x1x8x72xbf16>
    %12 = vector.shape_cast %11 : vector<1x1x8x72xbf16> to vector<8x72xbf16>
    %c2 = arith.constant 2 : index
    %c0_17 = arith.constant 0 : index
    %c0_18 = arith.constant 0 : index
    %13 = vector.load %arg2[%c2, %c0_17, %c0_18] : memref<9x16x8xbf16, #tpu.memory_space<vmem>>, vector<1x16x8xbf16>
    %14 = vector.shape_cast %13 : vector<1x16x8xbf16> to vector<16x8xbf16>
    %cst_19 = arith.constant dense<0.000000e+00> : vector<16x72xf32>
    %15 = tpu.matmul %14, %12, %cst_19 {dimension_numbers = #tpu.dot_dimension_numbers<[1], [0], [0], [1], [0, 0, 1, 1], [], []>} : vector<16x8xbf16>, vector<8x72xbf16>, vector<16x72xf32> -> vector<16x72xf32>
    %16 = arith.addf %10, %15 : vector<16x72xf32>
    %c0_20 = arith.constant 0 : index
    %c2_21 = arith.constant 2 : index
    %c0_22 = arith.constant 0 : index
    %c0_23 = arith.constant 0 : index
    %17 = vector.load %arg1[%c0_20, %c2_21, %c0_22, %c0_23] : memref<1x4x8x90xbf16, #tpu.memory_space<vmem>>, vector<1x1x8x72xbf16>
    %18 = vector.shape_cast %17 : vector<1x1x8x72xbf16> to vector<8x72xbf16>
    %c3 = arith.constant 3 : index
    %c0_24 = arith.constant 0 : index
    %c0_25 = arith.constant 0 : index
    %19 = vector.load %arg2[%c3, %c0_24, %c0_25] : memref<9x16x8xbf16, #tpu.memory_space<vmem>>, vector<1x16x8xbf16>
    %20 = vector.shape_cast %19 : vector<1x16x8xbf16> to vector<16x8xbf16>
    %cst_26 = arith.constant dense<0.000000e+00> : vector<16x72xf32>
    %21 = tpu.matmul %20, %18, %cst_26 {dimension_numbers = #tpu.dot_dimension_numbers<[1], [0], [0], [1], [0, 0, 1, 1], [], []>} : vector<16x8xbf16>, vector<8x72xbf16>, vector<16x72xf32> -> vector<16x72xf32>
    %22 = arith.addf %16, %21 : vector<16x72xf32>
    %c0_27 = arith.constant 0 : index
    %c3_28 = arith.constant 3 : index
    %c0_29 = arith.constant 0 : index
    %c0_30 = arith.constant 0 : index
    %23 = vector.load %arg1[%c0_27, %c3_28, %c0_29, %c0_30] : memref<1x4x8x90xbf16, #tpu.memory_space<vmem>>, vector<1x1x8x72xbf16>
    %24 = vector.shape_cast %23 : vector<1x1x8x72xbf16> to vector<8x72xbf16>
    %c4 = arith.constant 4 : index
    %c0_31 = arith.constant 0 : index
    %c0_32 = arith.constant 0 : index
    %25 = vector.load %arg2[%c4, %c0_31, %c0_32] : memref<9x16x8xbf16, #tpu.memory_space<vmem>>, vector<1x16x8xbf16>
    %26 = vector.shape_cast %25 : vector<1x16x8xbf16> to vector<16x8xbf16>
    %cst_33 = arith.constant dense<0.000000e+00> : vector<16x72xf32>
    %27 = tpu.matmul %26, %24, %cst_33 {dimension_numbers = #tpu.dot_dimension_numbers<[1], [0], [0], [1], [0, 0, 1, 1], [], []>} : vector<16x8xbf16>, vector<8x72xbf16>, vector<16x72xf32> -> vector<16x72xf32>
    %28 = arith.addf %22, %27 : vector<16x72xf32>
    %c0_34 = arith.constant 0 : index
    %c2_35 = arith.constant 2 : index
    %c0_36 = arith.constant 0 : index
    %c1_37 = arith.constant 1 : index
    %29 = vector.load %arg1[%c0_34, %c2_35, %c0_36, %c1_37] : memref<1x4x8x90xbf16, #tpu.memory_space<vmem>>, vector<1x1x8x72xbf16>
    %30 = vector.shape_cast %29 : vector<1x1x8x72xbf16> to vector<8x72xbf16>
    %c5 = arith.constant 5 : index
    %c0_38 = arith.constant 0 : index
    %c0_39 = arith.constant 0 : index
    %31 = vector.load %arg2[%c5, %c0_38, %c0_39] : memref<9x16x8xbf16, #tpu.memory_space<vmem>>, vector<1x16x8xbf16>
    %32 = vector.shape_cast %31 : vector<1x16x8xbf16> to vector<16x8xbf16>
    %cst_40 = arith.constant dense<0.000000e+00> : vector<16x72xf32>
    %33 = tpu.matmul %32, %30, %cst_40 {dimension_numbers = #tpu.dot_dimension_numbers<[1], [0], [0], [1], [0, 0, 1, 1], [], []>} : vector<16x8xbf16>, vector<8x72xbf16>, vector<16x72xf32> -> vector<16x72xf32>
    %34 = arith.addf %28, %33 : vector<16x72xf32>
    %c0_41 = arith.constant 0 : index
    %c0_42 = arith.constant 0 : index
    %c0_43 = arith.constant 0 : index
    %c9 = arith.constant 9 : index
    %35 = vector.load %arg1[%c0_41, %c0_42, %c0_43, %c9] : memref<1x4x8x90xbf16, #tpu.memory_space<vmem>>, vector<1x1x8x72xbf16>
    %36 = vector.shape_cast %35 : vector<1x1x8x72xbf16> to vector<8x72xbf16>
    %c6 = arith.constant 6 : index
    %c0_44 = arith.constant 0 : index
    %c0_45 = arith.constant 0 : index
    %37 = vector.load %arg2[%c6, %c0_44, %c0_45] : memref<9x16x8xbf16, #tpu.memory_space<vmem>>, vector<1x16x8xbf16>
    %38 = vector.shape_cast %37 : vector<1x16x8xbf16> to vector<16x8xbf16>
    %cst_46 = arith.constant dense<0.000000e+00> : vector<16x72xf32>
    %39 = tpu.matmul %38, %36, %cst_46 {dimension_numbers = #tpu.dot_dimension_numbers<[1], [0], [0], [1], [0, 0, 1, 1], [], []>} : vector<16x8xbf16>, vector<8x72xbf16>, vector<16x72xf32> -> vector<16x72xf32>
    %40 = arith.addf %34, %39 : vector<16x72xf32>
    %c0_47 = arith.constant 0 : index
    %c1_48 = arith.constant 1 : index
    %c0_49 = arith.constant 0 : index
    %c9_50 = arith.constant 9 : index
    %41 = vector.load %arg1[%c0_47, %c1_48, %c0_49, %c9_50] : memref<1x4x8x90xbf16, #tpu.memory_space<vmem>>, vector<1x1x8x72xbf16>
    %42 = vector.shape_cast %41 : vector<1x1x8x72xbf16> to vector<8x72xbf16>
    %c7 = arith.constant 7 : index
    %c0_51 = arith.constant 0 : index
    %c0_52 = arith.constant 0 : index
    %43 = vector.load %arg2[%c7, %c0_51, %c0_52] : memref<9x16x8xbf16, #tpu.memory_space<vmem>>, vector<1x16x8xbf16>
    %44 = vector.shape_cast %43 : vector<1x16x8xbf16> to vector<16x8xbf16>
    %cst_53 = arith.constant dense<0.000000e+00> : vector<16x72xf32>
    %45 = tpu.matmul %44, %42, %cst_53 {dimension_numbers = #tpu.dot_dimension_numbers<[1], [0], [0], [1], [0, 0, 1, 1], [], []>} : vector<16x8xbf16>, vector<8x72xbf16>, vector<16x72xf32> -> vector<16x72xf32>
    %46 = arith.addf %40, %45 : vector<16x72xf32>
    %c0_54 = arith.constant 0 : index
    %c0_55 = arith.constant 0 : index
    %c0_56 = arith.constant 0 : index
    %c10 = arith.constant 10 : index
    %47 = vector.load %arg1[%c0_54, %c0_55, %c0_56, %c10] : memref<1x4x8x90xbf16, #tpu.memory_space<vmem>>, vector<1x1x8x72xbf16>
    %48 = vector.shape_cast %47 : vector<1x1x8x72xbf16> to vector<8x72xbf16>
    %c8 = arith.constant 8 : index
    %c0_57 = arith.constant 0 : index
    %c0_58 = arith.constant 0 : index
    %49 = vector.load %arg2[%c8, %c0_57, %c0_58] : memref<9x16x8xbf16, #tpu.memory_space<vmem>>, vector<1x16x8xbf16>
    %50 = vector.shape_cast %49 : vector<1x16x8xbf16> to vector<16x8xbf16>
    %cst_59 = arith.constant dense<0.000000e+00> : vector<16x72xf32>
    %51 = tpu.matmul %50, %48, %cst_59 {dimension_numbers = #tpu.dot_dimension_numbers<[1], [0], [0], [1], [0, 0, 1, 1], [], []>} : vector<16x8xbf16>, vector<8x72xbf16>, vector<16x72xf32> -> vector<16x72xf32>
    %52 = arith.addf %46, %51 : vector<16x72xf32>
    %c0_60 = arith.constant 0 : index
    %c0_61 = arith.constant 0 : index
    %53 = vector.load %arg3[%c0_60, %c0_61] : memref<16x1xf32, #tpu.memory_space<vmem>>, vector<16x1xf32>
    %54 = vector.broadcast %53 : vector<16x1xf32> to vector<16x72xf32>
    %55 = arith.addf %52, %54 : vector<16x72xf32>
    %cst_62 = arith.constant 0.000000e+00 : f32
    %56 = vector.broadcast %cst_62 : f32 to vector<16x72xf32>
    %57 = arith.maximumf %55, %56 : vector<16x72xf32>
    %c0_63 = arith.constant 0 : index
    %c0_64 = arith.constant 0 : index
    %c0_65 = arith.constant 0 : index
    %58 = vector.load %arg4[%c0_63, %c0_64, %c0_65] : memref<1x16x72xf32, #tpu.memory_space<vmem>>, vector<1x16x72xf32>
    %59 = vector.shape_cast %58 : vector<1x16x72xf32> to vector<16x72xf32>
    %60 = vector.shape_cast %57 : vector<16x72xf32> to vector<1x16x72xf32>
    tpu.vector_store %arg4[%c0_63, %c0_64, %c0_65], %60 {strides = array<i32>} : memref<1x16x72xf32, #tpu.memory_space<vmem>>, vector<1x16x72xf32>,
    return
  }
  func.func @transform_0(%arg0: i32) -> (i32, i32, i32, i32) {
    %c0_i32 = arith.constant 0 : i32
    %c0_i32_0 = arith.constant 0 : i32
    %c0_i32_1 = arith.constant 0 : i32
    %c0_i32_2 = arith.constant 0 : i32
    return %arg0, %c0_i32, %c0_i32_0, %c0_i32_1 : i32, i32, i32, i32
  }
  func.func @transform_1(%arg0: i32) -> (i32, i32, i32) {
    %c0_i32 = arith.constant 0 : i32
    %c0_i32_0 = arith.constant 0 : i32
    %c0_i32_1 = arith.constant 0 : i32
    %c0_i32_2 = arith.constant 0 : i32
    return %c0_i32, %c0_i32_0, %c0_i32_1 : i32, i32, i32
  }
  func.func @transform_2(%arg0: i32) -> (i32, i32) {
    %c0_i32 = arith.constant 0 : i32
    %c0_i32_0 = arith.constant 0 : i32
    %c0_i32_1 = arith.constant 0 : i32
    return %c0_i32, %c0_i32_0 : i32, i32
  }
  func.func @transform_3(%arg0: i32) -> (i32, i32, i32) {
    %c0_i32 = arith.constant 0 : i32
    %c0_i32_0 = arith.constant 0 : i32
    %c0_i32_1 = arith.constant 0 : i32
    return %arg0, %c0_i32, %c0_i32_0 : i32, i32, i32
  }
}

module attributes {stable_mosaic.version = 11 : i64} {
  func.func @kernel(%arg0: i32, %arg1: memref<1x4x16x30xbf16, #tpu.memory_space<vmem>>, %arg2: memref<9x32x16xbf16, #tpu.memory_space<vmem>>, %arg3: memref<32x1xf32, #tpu.memory_space<vmem>>, %arg4: memref<1x32x20xf32, #tpu.memory_space<vmem>>) attributes {dimension_semantics = [#tpu.dimension_semantics<parallel>], iteration_bounds = array<i64: 2>, scalar_prefetch = 0 : i64, scratch_operands = 0 : i64, tpu.core_type = #tpu.core_type<tc>, window_params = [{transform_indices = @transform_0, window_bounds = array<i64: 1, 4, 16, 30>}, {pipeline_mode = #tpu.pipeline_mode<synchronous>, transform_indices = @transform_1, window_bounds = array<i64: 9, 32, 16>}, {pipeline_mode = #tpu.pipeline_mode<synchronous>, transform_indices = @transform_2, window_bounds = array<i64: 32, 1>}, {transform_indices = @transform_3, window_bounds = array<i64: 1, 32, 20>}]} {
    %c0 = arith.constant 0 : index
    %c0_0 = arith.constant 0 : index
    %c0_1 = arith.constant 0 : index
    %c0_2 = arith.constant 0 : index
    %0 = vector.load %arg1[%c0, %c0_0, %c0_1, %c0_2] : memref<1x4x16x30xbf16, #tpu.memory_space<vmem>>, vector<1x1x16x20xbf16>
    %1 = vector.shape_cast %0 : vector<1x1x16x20xbf16> to vector<16x20xbf16>
    %c0_3 = arith.constant 0 : index
    %c0_4 = arith.constant 0 : index
    %c0_5 = arith.constant 0 : index
    %2 = vector.load %arg2[%c0_3, %c0_4, %c0_5] : memref<9x32x16xbf16, #tpu.memory_space<vmem>>, vector<1x32x16xbf16>
    %3 = vector.shape_cast %2 : vector<1x32x16xbf16> to vector<32x16xbf16>
    %cst = arith.constant dense<0.000000e+00> : vector<32x20xf32>
    %4 = tpu.matmul %3, %1, %cst {dimension_numbers = #tpu.dot_dimension_numbers<[1], [0], [0], [1], [0, 0, 1, 1], [], []>} : vector<32x16xbf16>, vector<16x20xbf16>, vector<32x20xf32> -> vector<32x20xf32>
    %c0_6 = arith.constant 0 : index
    %c1 = arith.constant 1 : index
    %c0_7 = arith.constant 0 : index
    %c0_8 = arith.constant 0 : index
    %5 = vector.load %arg1[%c0_6, %c1, %c0_7, %c0_8] : memref<1x4x16x30xbf16, #tpu.memory_space<vmem>>, vector<1x1x16x20xbf16>
    %6 = vector.shape_cast %5 : vector<1x1x16x20xbf16> to vector<16x20xbf16>
    %c1_9 = arith.constant 1 : index
    %c0_10 = arith.constant 0 : index
    %c0_11 = arith.constant 0 : index
    %7 = vector.load %arg2[%c1_9, %c0_10, %c0_11] : memref<9x32x16xbf16, #tpu.memory_space<vmem>>, vector<1x32x16xbf16>
    %8 = vector.shape_cast %7 : vector<1x32x16xbf16> to vector<32x16xbf16>
    %cst_12 = arith.constant dense<0.000000e+00> : vector<32x20xf32>
    %9 = tpu.matmul %8, %6, %cst_12 {dimension_numbers = #tpu.dot_dimension_numbers<[1], [0], [0], [1], [0, 0, 1, 1], [], []>} : vector<32x16xbf16>, vector<16x20xbf16>, vector<32x20xf32> -> vector<32x20xf32>
    %10 = arith.addf %4, %9 : vector<32x20xf32>
    %c0_13 = arith.constant 0 : index
    %c0_14 = arith.constant 0 : index
    %c0_15 = arith.constant 0 : index
    %c1_16 = arith.constant 1 : index
    %11 = vector.load %arg1[%c0_13, %c0_14, %c0_15, %c1_16] : memref<1x4x16x30xbf16, #tpu.memory_space<vmem>>, vector<1x1x16x20xbf16>
    %12 = vector.shape_cast %11 : vector<1x1x16x20xbf16> to vector<16x20xbf16>
    %c2 = arith.constant 2 : index
    %c0_17 = arith.constant 0 : index
    %c0_18 = arith.constant 0 : index
    %13 = vector.load %arg2[%c2, %c0_17, %c0_18] : memref<9x32x16xbf16, #tpu.memory_space<vmem>>, vector<1x32x16xbf16>
    %14 = vector.shape_cast %13 : vector<1x32x16xbf16> to vector<32x16xbf16>
    %cst_19 = arith.constant dense<0.000000e+00> : vector<32x20xf32>
    %15 = tpu.matmul %14, %12, %cst_19 {dimension_numbers = #tpu.dot_dimension_numbers<[1], [0], [0], [1], [0, 0, 1, 1], [], []>} : vector<32x16xbf16>, vector<16x20xbf16>, vector<32x20xf32> -> vector<32x20xf32>
    %16 = arith.addf %10, %15 : vector<32x20xf32>
    %c0_20 = arith.constant 0 : index
    %c2_21 = arith.constant 2 : index
    %c0_22 = arith.constant 0 : index
    %c0_23 = arith.constant 0 : index
    %17 = vector.load %arg1[%c0_20, %c2_21, %c0_22, %c0_23] : memref<1x4x16x30xbf16, #tpu.memory_space<vmem>>, vector<1x1x16x20xbf16>
    %18 = vector.shape_cast %17 : vector<1x1x16x20xbf16> to vector<16x20xbf16>
    %c3 = arith.constant 3 : index
    %c0_24 = arith.constant 0 : index
    %c0_25 = arith.constant 0 : index
    %19 = vector.load %arg2[%c3, %c0_24, %c0_25] : memref<9x32x16xbf16, #tpu.memory_space<vmem>>, vector<1x32x16xbf16>
    %20 = vector.shape_cast %19 : vector<1x32x16xbf16> to vector<32x16xbf16>
    %cst_26 = arith.constant dense<0.000000e+00> : vector<32x20xf32>
    %21 = tpu.matmul %20, %18, %cst_26 {dimension_numbers = #tpu.dot_dimension_numbers<[1], [0], [0], [1], [0, 0, 1, 1], [], []>} : vector<32x16xbf16>, vector<16x20xbf16>, vector<32x20xf32> -> vector<32x20xf32>
    %22 = arith.addf %16, %21 : vector<32x20xf32>
    %c0_27 = arith.constant 0 : index
    %c3_28 = arith.constant 3 : index
    %c0_29 = arith.constant 0 : index
    %c0_30 = arith.constant 0 : index
    %23 = vector.load %arg1[%c0_27, %c3_28, %c0_29, %c0_30] : memref<1x4x16x30xbf16, #tpu.memory_space<vmem>>, vector<1x1x16x20xbf16>
    %24 = vector.shape_cast %23 : vector<1x1x16x20xbf16> to vector<16x20xbf16>
    %c4 = arith.constant 4 : index
    %c0_31 = arith.constant 0 : index
    %c0_32 = arith.constant 0 : index
    %25 = vector.load %arg2[%c4, %c0_31, %c0_32] : memref<9x32x16xbf16, #tpu.memory_space<vmem>>, vector<1x32x16xbf16>
    %26 = vector.shape_cast %25 : vector<1x32x16xbf16> to vector<32x16xbf16>
    %cst_33 = arith.constant dense<0.000000e+00> : vector<32x20xf32>
    %27 = tpu.matmul %26, %24, %cst_33 {dimension_numbers = #tpu.dot_dimension_numbers<[1], [0], [0], [1], [0, 0, 1, 1], [], []>} : vector<32x16xbf16>, vector<16x20xbf16>, vector<32x20xf32> -> vector<32x20xf32>
    %28 = arith.addf %22, %27 : vector<32x20xf32>
    %c0_34 = arith.constant 0 : index
    %c2_35 = arith.constant 2 : index
    %c0_36 = arith.constant 0 : index
    %c1_37 = arith.constant 1 : index
    %29 = vector.load %arg1[%c0_34, %c2_35, %c0_36, %c1_37] : memref<1x4x16x30xbf16, #tpu.memory_space<vmem>>, vector<1x1x16x20xbf16>
    %30 = vector.shape_cast %29 : vector<1x1x16x20xbf16> to vector<16x20xbf16>
    %c5 = arith.constant 5 : index
    %c0_38 = arith.constant 0 : index
    %c0_39 = arith.constant 0 : index
    %31 = vector.load %arg2[%c5, %c0_38, %c0_39] : memref<9x32x16xbf16, #tpu.memory_space<vmem>>, vector<1x32x16xbf16>
    %32 = vector.shape_cast %31 : vector<1x32x16xbf16> to vector<32x16xbf16>
    %cst_40 = arith.constant dense<0.000000e+00> : vector<32x20xf32>
    %33 = tpu.matmul %32, %30, %cst_40 {dimension_numbers = #tpu.dot_dimension_numbers<[1], [0], [0], [1], [0, 0, 1, 1], [], []>} : vector<32x16xbf16>, vector<16x20xbf16>, vector<32x20xf32> -> vector<32x20xf32>
    %34 = arith.addf %28, %33 : vector<32x20xf32>
    %c0_41 = arith.constant 0 : index
    %c0_42 = arith.constant 0 : index
    %c0_43 = arith.constant 0 : index
    %c5_44 = arith.constant 5 : index
    %35 = vector.load %arg1[%c0_41, %c0_42, %c0_43, %c5_44] : memref<1x4x16x30xbf16, #tpu.memory_space<vmem>>, vector<1x1x16x20xbf16>
    %36 = vector.shape_cast %35 : vector<1x1x16x20xbf16> to vector<16x20xbf16>
    %c6 = arith.constant 6 : index
    %c0_45 = arith.constant 0 : index
    %c0_46 = arith.constant 0 : index
    %37 = vector.load %arg2[%c6, %c0_45, %c0_46] : memref<9x32x16xbf16, #tpu.memory_space<vmem>>, vector<1x32x16xbf16>
    %38 = vector.shape_cast %37 : vector<1x32x16xbf16> to vector<32x16xbf16>
    %cst_47 = arith.constant dense<0.000000e+00> : vector<32x20xf32>
    %39 = tpu.matmul %38, %36, %cst_47 {dimension_numbers = #tpu.dot_dimension_numbers<[1], [0], [0], [1], [0, 0, 1, 1], [], []>} : vector<32x16xbf16>, vector<16x20xbf16>, vector<32x20xf32> -> vector<32x20xf32>
    %40 = arith.addf %34, %39 : vector<32x20xf32>
    %c0_48 = arith.constant 0 : index
    %c1_49 = arith.constant 1 : index
    %c0_50 = arith.constant 0 : index
    %c5_51 = arith.constant 5 : index
    %41 = vector.load %arg1[%c0_48, %c1_49, %c0_50, %c5_51] : memref<1x4x16x30xbf16, #tpu.memory_space<vmem>>, vector<1x1x16x20xbf16>
    %42 = vector.shape_cast %41 : vector<1x1x16x20xbf16> to vector<16x20xbf16>
    %c7 = arith.constant 7 : index
    %c0_52 = arith.constant 0 : index
    %c0_53 = arith.constant 0 : index
    %43 = vector.load %arg2[%c7, %c0_52, %c0_53] : memref<9x32x16xbf16, #tpu.memory_space<vmem>>, vector<1x32x16xbf16>
    %44 = vector.shape_cast %43 : vector<1x32x16xbf16> to vector<32x16xbf16>
    %cst_54 = arith.constant dense<0.000000e+00> : vector<32x20xf32>
    %45 = tpu.matmul %44, %42, %cst_54 {dimension_numbers = #tpu.dot_dimension_numbers<[1], [0], [0], [1], [0, 0, 1, 1], [], []>} : vector<32x16xbf16>, vector<16x20xbf16>, vector<32x20xf32> -> vector<32x20xf32>
    %46 = arith.addf %40, %45 : vector<32x20xf32>
    %c0_55 = arith.constant 0 : index
    %c0_56 = arith.constant 0 : index
    %c0_57 = arith.constant 0 : index
    %c6_58 = arith.constant 6 : index
    %47 = vector.load %arg1[%c0_55, %c0_56, %c0_57, %c6_58] : memref<1x4x16x30xbf16, #tpu.memory_space<vmem>>, vector<1x1x16x20xbf16>
    %48 = vector.shape_cast %47 : vector<1x1x16x20xbf16> to vector<16x20xbf16>
    %c8 = arith.constant 8 : index
    %c0_59 = arith.constant 0 : index
    %c0_60 = arith.constant 0 : index
    %49 = vector.load %arg2[%c8, %c0_59, %c0_60] : memref<9x32x16xbf16, #tpu.memory_space<vmem>>, vector<1x32x16xbf16>
    %50 = vector.shape_cast %49 : vector<1x32x16xbf16> to vector<32x16xbf16>
    %cst_61 = arith.constant dense<0.000000e+00> : vector<32x20xf32>
    %51 = tpu.matmul %50, %48, %cst_61 {dimension_numbers = #tpu.dot_dimension_numbers<[1], [0], [0], [1], [0, 0, 1, 1], [], []>} : vector<32x16xbf16>, vector<16x20xbf16>, vector<32x20xf32> -> vector<32x20xf32>
    %52 = arith.addf %46, %51 : vector<32x20xf32>
    %c0_62 = arith.constant 0 : index
    %c0_63 = arith.constant 0 : index
    %53 = vector.load %arg3[%c0_62, %c0_63] : memref<32x1xf32, #tpu.memory_space<vmem>>, vector<32x1xf32>
    %54 = vector.broadcast %53 : vector<32x1xf32> to vector<32x20xf32>
    %55 = arith.addf %52, %54 : vector<32x20xf32>
    %cst_64 = arith.constant 0.000000e+00 : f32
    %56 = vector.broadcast %cst_64 : f32 to vector<32x20xf32>
    %57 = arith.maximumf %55, %56 : vector<32x20xf32>
    %c0_65 = arith.constant 0 : index
    %c0_66 = arith.constant 0 : index
    %c0_67 = arith.constant 0 : index
    %58 = vector.load %arg4[%c0_65, %c0_66, %c0_67] : memref<1x32x20xf32, #tpu.memory_space<vmem>>, vector<1x32x20xf32>
    %59 = vector.shape_cast %58 : vector<1x32x20xf32> to vector<32x20xf32>
    %60 = vector.shape_cast %57 : vector<32x20xf32> to vector<1x32x20xf32>
    tpu.vector_store %arg4[%c0_65, %c0_66, %c0_67], %60 {strides = array<i32>} : memref<1x32x20xf32, #tpu.memory_space<vmem>>, vector<1x32x20xf32>,
    return
  }
  func.func @transform_0(%arg0: i32) -> (i32, i32, i32, i32) {
    %c0_i32 = arith.constant 0 : i32
    %c0_i32_0 = arith.constant 0 : i32
    %c0_i32_1 = arith.constant 0 : i32
    %c0_i32_2 = arith.constant 0 : i32
    return %arg0, %c0_i32, %c0_i32_0, %c0_i32_1 : i32, i32, i32, i32
  }
  func.func @transform_1(%arg0: i32) -> (i32, i32, i32) {
    %c0_i32 = arith.constant 0 : i32
    %c0_i32_0 = arith.constant 0 : i32
    %c0_i32_1 = arith.constant 0 : i32
    %c0_i32_2 = arith.constant 0 : i32
    return %c0_i32, %c0_i32_0, %c0_i32_1 : i32, i32, i32
  }
  func.func @transform_2(%arg0: i32) -> (i32, i32) {
    %c0_i32 = arith.constant 0 : i32
    %c0_i32_0 = arith.constant 0 : i32
    %c0_i32_1 = arith.constant 0 : i32
    return %c0_i32, %c0_i32_0 : i32, i32
  }
  func.func @transform_3(%arg0: i32) -> (i32, i32, i32) {
    %c0_i32 = arith.constant 0 : i32
    %c0_i32_0 = arith.constant 0 : i32
    %c0_i32_1 = arith.constant 0 : i32
    return %arg0, %c0_i32, %c0_i32_0 : i32, i32, i32
  }
}

</mosaic_0001>

<bundles_post_ra>
// kernel: generalized_rcnn_g_forward.3
= control target key start
LH: loop header
LB: loop body
LE: loop exit
PB: predicated region body
PF: predicated region fallthrough
CT: control target
= control target key end

     0   :  { %s988_s12 = smov 0   ;;  %s1116_s0 = inlined_call_operand.vmem [shape: bf16[2,1,4,342], index: 0, kind: input, shape index: {}]   ;;  %s1117_s1 = inlined_call_operand.vmem [shape: bf16[9,8,4], index: 1, kind: input, shape index: {}]   ;;  %s1118_s2 = inlined_call_operand.vmem [shape: f32[8,1], index: 2, kind: input, shape index: {}]   ;;  %s1119_s3 = inlined_call_operand.vmem [shape: f32[2,8,288], index: 3, kind: output, shape index: {}]  }
   0x1 LB: > { %s887_s13 = sadd.s32 4294967295, %s957_s12   ;;  %p891_p0 = scmp.ge.s32.totalorder %s957_s12, 1  ;;  %s957_s12 = sphi %s988_s12, %s13_s12  }
   0x2   : > { %p137_p1 = scmp.lt.s32.totalorder %s957_s12, 3 }
   0x4   : > { %p138_p2 = pnand %p891_p0, %p137_p1 }
   0x5   : > { %p161_p3 = scmp.lt.s32.totalorder (!%p138_p2), %s887_s13, 1  ;;  %s959_s18 = smov (!%p138_p2), 127  }
   0x6   : > { %141 = sbr.rel (%p138_p2) target bundleno = 382 (0x17e), region = 32  ;;  %s960_s19 = smov (!%p138_p2), 126  }
   0x7   : > { %s961_s20 = smov (!%p138_p2), 110   ;;  %s962_s21 = smov (!%p138_p2), 109  }
   0x8   : > { %s963_s22 = smov (!%p138_p2), 108   ;;  %s964_s23 = smov (!%p138_p2), 92  }
   0x9   : > { %s965_s24 = smov (!%p138_p2), 91   ;;  %s966_s25 = smov (!%p138_p2), 90  }
   0xb   : > { %s1121_s13 = smov (!%p161_p3, %s887_s13), 1  ;;  %vm197_vm0 = vcmask 1041408   ;;  %v173_v36 = vld [vmem:[%s1117_s1] sm:$0xf]  ;;  %vm193_vm1 = vcmask 31744   ;;  %vm190_vm2 = vcmask 1039360  }
   0xc   : > { %s931_s14 = smul.u32 6, %s1121_s13  ;;  %v894_v44 = vld [vmem:[%s1117_s1 + $0x4] sm:$0xf]  ;;  %vm315_vm3 = vcmask 1031168   ;;  %v901_v48 = vld [vmem:[%s1117_s1 + $0x8] sm:$0xf] }
   0xd   : > { %vm389_vm4 = vcmask 900096   ;;  %vm463_vm5 = vcmask 891904   ;;  %vm537_vm6 = vcmask 883712   ;;  %vm611_vm7 = vcmask 752640  }
   0xe   : > { %s1002_s17 = scalar_lea.vmem %s1116_s0, %s931_s14  ;;  %vm685_vm8 = vcmask 744448   ;;  %vm759_vm9 = vcmask 736256   ;;  %vm830_vm10 = vcmask 261120  }
   0xf   : > { %v172_v0 = vld [vmem:[%s1002_s17] sm:$0x3f] }
  0x10   : > { %177 = vst [vmem:[#allocation1] ss:$4 sm:$0xff] %v172_v0  ;;  %v298_v4 = vld [vmem:[%s1002_s17] sm:$0x3f] }
  0x11   : > { %v372_v8 = vld [vmem:[%s1002_s17] sm:$0x3f] }
  0x12   : > { %v446_v12 = vld [vmem:[%s1002_s17] sm:$0x3f] }
  0x13   : > { %v520_v16 = vld [vmem:[%s1002_s17] sm:$0x3f] }
  0x14   : > { %v594_v20 = vld [vmem:[%s1002_s17] sm:$0x3f] }
  0x15   : > { %v668_v24 = vld [vmem:[%s1002_s17] sm:$0x3f] }
  0x16   : > { %v742_v28 = vld [vmem:[%s1002_s17] sm:$0x3f] }
  0x17   : > { %v182_v1 = vld.sshfl [vmem:[#allocation1 + $0x10] sm:$0xff pattern:$0x73625140]  ;;  %v180_v2 = vld.sshfl [vmem:[#allocation1 + $0x8] sm:$0xff pattern:$0x73625140] }
  0x18   : > { %188 = vrot.lane.b32.xlu0 %v182_v1, %s959_s18  ;;  %186 = vrot.lane.b32.xlu1 %v180_v2, %s959_s18  ;;  %v178_v3 = vld.sshfl [vmem:[#allocation1] sm:$0xff pattern:$0x73625140]  ;;  %v905_v1 = vld [vmem:[%s1117_s1 + $0xc] sm:$0xf] }
  0x19   : > { %246 = vst [vmem:[#allocation1] ss:$4 sm:$0xff] %v172_v0 }
  0x20   : > { %184 = vrot.lane.b32.xlu0 %v178_v3, %s959_s18  ;;  %v1006_v5 = vld.sshfl [vmem:[#allocation1] sm:$0xff pattern:$0x73625140]  ;;  %v1008_v6 = vld.sshfl [vmem:[#allocation1 + $0x8] sm:$0xff pattern:$0x73625140] }
  0x21   : > { %v1010_v7 = vld.sshfl [vmem:[#allocation1 + $0x10] sm:$0xff pattern:$0x73625140]  ;;  %v253_v35 = vsel %vm197_vm0, %v1006_v5, 0  ;;  %v255_v51 = vsel %vm197_vm0, %v1008_v6, 0 }
  0x22   : > { %302 = vst [vmem:[#allocation1] ss:$4 sm:$0xff] %v298_v4  ;;  %266 = vmatpush.bf16.msra.mxu3 %v253_v35  ;;  %v257_v42 = vsel %vm197_vm0, %v1010_v7, 0 }
  0x25   : > { %898 = vmatmul.msk.bf16.vlgmr.msra.gmra.mxu3 %vm193_vm1, %v173_v36 }
  0x29   : > { %v303_v9 = vld.sshfl [vmem:[#allocation1] sm:$0xff pattern:$0x73625140]  ;;  %v305_v10 = vld.sshfl [vmem:[#allocation1 + $0x8] sm:$0xff pattern:$0x73625140] }
  0x2a   : > { %309 = vrot.lane.b32.xlu1 %v303_v9, %s960_s19  ;;  %311 = vrot.lane.b32.xlu2 %v305_v10, %s960_s19  ;;  %v307_v11 = vld.sshfl [vmem:[#allocation1 + $0x10] sm:$0xff pattern:$0x73625140] }
  0x2b   : > { %376 = vst [vmem:[#allocation1] ss:$4 sm:$0xff] %v372_v8 }
  0x32   : > { %v381_v13 = vld.sshfl [vmem:[#allocation1 + $0x10] sm:$0xff pattern:$0x73625140]  ;;  %v377_v14 = vld.sshfl [vmem:[#allocation1] sm:$0xff pattern:$0x73625140]  ;;  %313 = vrot.lane.b32.xlu2 %v307_v11, %s960_s19 }
  0x33   : > { %387 = vrot.lane.b32.xlu1 %v381_v13, %s961_s20  ;;  %v379_v15 = vld.sshfl [vmem:[#allocation1 + $0x8] sm:$0xff pattern:$0x73625140] }
  0x34   : > { %385 = vrot.lane.b32.xlu0 %v379_v15, %s961_s20  ;;  %450 = vst [vmem:[#allocation1] ss:$4 sm:$0xff] %v446_v12  ;;  %v913_v15 = vld [vmem:[%s1117_s1 + $0x14] sm:$0xf] }
  0x3a   : > { %383 = vrot.lane.b32.xlu2 %v377_v14, %s961_s20 }
  0x3b   : > { %v455_v17 = vld.sshfl [vmem:[#allocation1 + $0x10] sm:$0xff pattern:$0x73625140]  ;;  %v453_v18 = vld.sshfl [vmem:[#allocation1 + $0x8] sm:$0xff pattern:$0x73625140] }
  0x3c   : > { %461 = vrot.lane.b32.xlu0 %v455_v17, %s962_s21  ;;  %v451_v19 = vld.sshfl [vmem:[#allocation1] sm:$0xff pattern:$0x73625140] }
  0x3d   : > { %457 = vrot.lane.b32.xlu1 %v451_v19, %s962_s21  ;;  %524 = vst [vmem:[#allocation1] ss:$4 sm:$0xff] %v520_v16  ;;  %v909_v16 = vld [vmem:[%s1117_s1 + $0x10] sm:$0xf] }
  0x42   : > { %459 = vrot.lane.b32.xlu2 %v453_v18, %s962_s21  ;;  %s932_s21 = smul.u32 24, %s1121_s13 }
  0x44   : > { %v527_v21 = vld.sshfl [vmem:[#allocation1 + $0x8] sm:$0xff pattern:$0x73625140]  ;;  %v525_v22 = vld.sshfl [vmem:[#allocation1] sm:$0xff pattern:$0x73625140] }
  0x45   : > { %533 = vrot.lane.b32.xlu1 %v527_v21, %s963_s22  ;;  %531 = vrot.lane.b32.xlu0 %v525_v22, %s963_s22  ;;  %v529_v23 = vld.sshfl [vmem:[#allocation1 + $0x10] sm:$0xff pattern:$0x73625140] }
  0x46   : > { %598 = vst [vmem:[#allocation1] ss:$4 sm:$0xff] %v594_v20 }
  0x4d   : > { %535 = vrot.lane.b32.xlu1 %v529_v23, %s963_s22  ;;  %v603_v25 = vld.sshfl [vmem:[#allocation1 + $0x10] sm:$0xff pattern:$0x73625140]  ;;  %v601_v26 = vld.sshfl [vmem:[#allocation1 + $0x8] sm:$0xff pattern:$0x73625140] }
  0x4e   : > { %607 = vrot.lane.b32.xlu0 %v601_v26, %s964_s23  ;;  %v599_v27 = vld.sshfl [vmem:[#allocation1] sm:$0xff pattern:$0x73625140] }
  0x4f   : > { %605 = vrot.lane.b32.xlu2 %v599_v27, %s964_s23  ;;  %672 = vst [vmem:[#allocation1] ss:$4 sm:$0xff] %v668_v24 }
  0x56   : > { %v673_v29 = vld.sshfl [vmem:[#allocation1] sm:$0xff pattern:$0x73625140]  ;;  %v677_v30 = vld.sshfl [vmem:[#allocation1 + $0x10] sm:$0xff pattern:$0x73625140] }
  0x57   : > { %683 = vrot.lane.b32.xlu1 %v677_v30, %s965_s24  ;;  %v675_v31 = vld.sshfl [vmem:[#allocation1 + $0x8] sm:$0xff pattern:$0x73625140]  ;;  %609 = vrot.lane.b32.xlu2 %v603_v25, %s964_s23 }
  0x58   : > { %681 = vrot.lane.b32.xlu0 %v675_v31, %s965_s24  ;;  %746 = vst [vmem:[#allocation1] ss:$4 sm:$0xff] %v742_v28 }
  0x5f   : > { %v751_v32 = vld.sshfl [vmem:[#allocation1 + $0x10] sm:$0xff pattern:$0x73625140]  ;;  %v747_v33 = vld.sshfl [vmem:[#allocation1] sm:$0xff pattern:$0x73625140]  ;;  %679 = vrot.lane.b32.xlu2 %v673_v29, %s965_s24  ;;  %s170_s24 = scalar_lea.vmem %s1119_s3, %s932_s21 }
  0x60   : > { %757 = vrot.lane.b32.xlu0 %v751_v32, %s966_s25  ;;  %753 = vrot.lane.b32.xlu1 %v747_v33, %s966_s25  ;;  %v749_v34 = vld.sshfl [vmem:[#allocation1 + $0x8] sm:$0xff pattern:$0x73625140] }
  0x67   : > { %755 = vrot.lane.b32.xlu2 %v749_v34, %s966_s25  ;;  %v917_v34 = vld [vmem:[%s1117_s1 + $0x18] sm:$0xf] }
  0x84   : > { %v312_v37 = vpop.permute.xlu2 %311 }
  0x8a   : > { %v189_v38 = vpop.permute.xlu0 %188  ;;  %v187_v39 = vpop.permute.xlu1 %186 }
  0x8b   : > { %v192_v40 = vsel %vm190_vm2, %v187_v39, %v189_v38  ;;  %v205_v41 = vsel %vm197_vm0, %v189_v38, 0 }
  0x8c   : > { %v202_v43 = vsel %vm197_vm0, %v192_v40, 0  ;;  %240 = vmatpush.bf16.msra.mxu2 %v205_v41  ;;  %v314_v45 = vpop.permute.xlu2 %313 }
  0x8d   : > { %227 = vmatpush.bf16.msra.mxu1 %v202_v43  ;;  %v317_v46 = vsel %vm315_vm3, %v312_v37, %v314_v45  ;;  %v328_v53 = vsel %vm197_vm0, %v314_v45, 0  ;;  %v816_v45 = vld [vmem:[%s1118_s2] sm:$0xff] }
  0x8e   : > { %v325_v47 = vsel %vm197_vm0, %v317_v46, 0  ;;  %v967_v46 = vmov 0  }
  0x8f   : > { %897 = vmatmul.msk.bf16.vlgmr.msra.gmra.mxu2 %vm193_vm1, %v894_v44  ;;  %350 = vmatpush.bf16.msrb.mxu3 %v325_v47  ;;  %v921_v47 = vld [vmem:[%s1117_s1 + $0x1c] sm:$0xf] }
  0x90   : > { %896 = vmatmul.msk.bf16.vlgmr.msra.gmra.mxu1 %vm193_vm1, %v894_v44  ;;  %950 = vset.pattern.permute.xlu0 %v967_v46 }
  0x91   : > { %292 = vmatpush.bf16.msrb.mxu1 %v257_v42  ;;  %819 = vperm.xlu0 %950, %v816_v45  }
  0x92   : > { %v185_v49 = vpop.permute.xlu0 %184  ;;  %903 = vmatmul.msk.bf16.vlgmr.msrb.gmra.mxu3 %vm193_vm1, %v901_v48 }
  0x93   : > { %v191_v50 = vsel %vm190_vm2, %v185_v49, %v187_v39 }
  0x94   : > { %v199_v52 = vsel %vm197_vm0, %v191_v50, 0  ;;  %v384_v57 = vpop.permute.xlu2 %383 }
  0x95   : > { %214 = vmatpush.bf16.msra.mxu0 %v199_v52 }
  0x98   : > { %895 = vmatmul.msk.bf16.vlgmr.msra.gmra.mxu0 %vm193_vm1, %v894_v44 }
  0x99   : > { %279 = vmatpush.bf16.msrb.mxu0 %v255_v51 }
  0x9c   : > { %v310_v54 = vpop.permute.xlu1 %309  ;;  %v460_v2 = vpop.permute.xlu2 %459 }
  0x9d   : > { %363 = vmatpush.bf16.msra.mxu0 %v328_v53  ;;  %v316_v55 = vsel %vm315_vm3, %v310_v54, %v312_v37 }
  0x9e   : > { %v322_v56 = vsel %vm197_vm0, %v316_v55, 0 }
  0x9f   : > { %337 = vmatpush.bf16.msrb.mxu2 %v322_v56 }
  0xa0   : > { %900 = vmatmul.msk.bf16.vlgmr.msrb.gmra.mxu1 %vm193_vm1, %v173_v36 }
  0xa2   : > { %902 = vmatmul.msk.bf16.vlgmr.msrb.gmra.mxu2 %vm193_vm1, %v901_v48 }
  0xa5   : > { %v388_v58 = vpop.permute.xlu1 %387 }
  0xa6   : > { %v402_v59 = vsel %vm197_vm0, %v388_v58, 0  ;;  %v386_v60 = vpop.permute.xlu0 %385 }
  0xa7   : > { %v391_v61 = vsel %vm389_vm4, %v386_v60, %v388_v58  ;;  %v390_v62 = vsel %vm389_vm4, %v384_v57, %v386_v60  ;;  %437 = vmatpush.bf16.msra.mxu3 %v402_v59 }
  0xa8   : > { %899 = vmatmul.msk.bf16.vlgmr.msrb.gmra.mxu0 %vm193_vm1, %v173_v36  ;;  %v399_v63 = vsel %vm197_vm0, %v391_v61, 0  ;;  %v396_v0 = vsel %vm197_vm0, %v390_v62, 0  ;;  %v268_v49 = vpop.f32.mrf.mxu3 }
  0xa9   : > { %411 = vmatpush.bf16.msra.mxu1 %v396_v0  ;;  %424 = vmatpush.bf16.msra.mxu2 %v399_v63  ;;  %v606_v10 = vpop.permute.xlu2 %605 }
  0xaa   : > { %908 = vmatmul.msk.bf16.vlgmr.msra.gmra.mxu3 %vm193_vm1, %v905_v1 }
  0xae   : > { %v462_v3 = vpop.permute.xlu0 %461 }
  0xaf   : > { %v476_v4 = vsel %vm197_vm0, %v462_v3, 0  ;;  %v458_v5 = vpop.permute.xlu1 %457  ;;  %v465_v6 = vsel %vm463_vm5, %v460_v2, %v462_v3 }
  0xb0   : > { %906 = vmatmul.msk.bf16.vlgmr.msra.gmra.mxu1 %vm193_vm1, %v905_v1  ;;  %v464_v7 = vsel %vm463_vm5, %v458_v5, %v460_v2  ;;  %v473_v8 = vsel %vm197_vm0, %v465_v6, 0  ;;  %511 = vmatpush.bf16.msrb.mxu2 %v476_v4  ;;  %v270_v50 = vpop.f32.mrf.mxu3 }
  0xb1   : > { %v470_v9 = vsel %vm197_vm0, %v464_v7, 0  ;;  %498 = vmatpush.bf16.msrb.mxu1 %v473_v8  ;;  %v610_v17 = vpop.permute.xlu2 %609 }
  0xb2   : > { %907 = vmatmul.msk.bf16.vlgmr.msra.gmra.mxu2 %vm193_vm1, %v905_v1  ;;  %485 = vmatpush.bf16.msrb.mxu0 %v470_v9  ;;  %v624_v27 = vsel %vm197_vm0, %v610_v17, 0 }
  0xb7   : > { %v534_v11 = vpop.permute.xlu1 %533  ;;  %v532_v12 = vpop.permute.xlu0 %531 }
  0xb8   : > { %904 = vmatmul.msk.bf16.vlgmr.msra.gmra.mxu0 %vm193_vm1, %v901_v48  ;;  %v538_v13 = vsel %vm537_vm6, %v532_v12, %v534_v11  ;;  %v925_v48 = vld [vmem:[%s1117_s1 + $0x20] sm:$0xf] }
  0xb9   : > { %v544_v14 = vsel %vm197_vm0, %v538_v13, 0  ;;  %v680_v28 = vpop.permute.xlu2 %679 }
  0xba   : > { %559 = vmatpush.bf16.msrb.mxu3 %v544_v14 }
  0xbd   : > { %914 = vmatmul.msk.bf16.vlgmr.msrb.gmra.mxu3 %vm193_vm1, %v913_v15 }
  0xbf   : > { %v536_v18 = vpop.permute.xlu1 %535 }
  0xc0   : > { %911 = vmatmul.msk.bf16.vlgmr.msrb.gmra.mxu1 %vm193_vm1, %v909_v16  ;;  %v539_v19 = vsel %vm537_vm6, %v534_v11, %v536_v18  ;;  %v550_v20 = vsel %vm197_vm0, %v536_v18, 0  ;;  %v608_v21 = vpop.permute.xlu0 %607 }
  0xc1   : > { %v547_v22 = vsel %vm197_vm0, %v539_v19, 0  ;;  %v612_v23 = vsel %vm611_vm7, %v606_v10, %v608_v21  ;;  %v613_v24 = vsel %vm611_vm7, %v608_v21, %v610_v17  ;;  %585 = vmatpush.bf16.msra.mxu1 %v550_v20  ;;  %v756_v37 = vpop.permute.xlu2 %755 }
  0xc2   : > { %912 = vmatmul.msk.bf16.vlgmr.msrb.gmra.mxu2 %vm193_vm1, %v909_v16  ;;  %v618_v25 = vsel %vm197_vm0, %v612_v23, 0  ;;  %v621_v26 = vsel %vm197_vm0, %v613_v24, 0  ;;  %572 = vmatpush.bf16.msra.mxu0 %v547_v22 }
  0xc3   : > { %633 = vmatpush.bf16.msra.mxu2 %v618_v25  ;;  %646 = vmatpush.bf16.msra.mxu3 %v621_v26 }
  0xc8   : > { %910 = vmatmul.msk.bf16.vlgmr.msrb.gmra.mxu0 %vm193_vm1, %v909_v16 }
  0xc9   : > { %659 = vmatpush.bf16.msrb.mxu0 %v624_v27  ;;  %v684_v29 = vpop.permute.xlu1 %683 }
  0xca   : > { %v698_v30 = vsel %vm197_vm0, %v684_v29, 0  ;;  %v682_v31 = vpop.permute.xlu0 %681 }
  0xcb   : > { %v687_v32 = vsel %vm685_vm8, %v682_v31, %v684_v29  ;;  %v686_v33 = vsel %vm685_vm8, %v680_v28, %v682_v31  ;;  %733 = vmatpush.bf16.msrb.mxu3 %v698_v30 }
  0xcc   : > { %v695_v35 = vsel %vm197_vm0, %v687_v32, 0  ;;  %v692_v36 = vsel %vm197_vm0, %v686_v33, 0 }
  0xcd   : > { %919 = vmatmul.msk.bf16.vlgmr.msra.gmra.mxu3 %vm193_vm1, %v917_v34  ;;  %707 = vmatpush.bf16.msrb.mxu1 %v692_v36 }
  0xce   : > { %720 = vmatpush.bf16.msrb.mxu2 %v695_v35 }
  0xd0   : > { %916 = vmatmul.msk.bf16.vlgmr.msra.gmra.mxu1 %vm193_vm1, %v913_v15 }
  0xd2   : > { %918 = vmatmul.msk.bf16.vlgmr.msra.gmra.mxu2 %vm193_vm1, %v917_v34  ;;  %v758_v38 = vpop.permute.xlu0 %757  ;;  %v754_v39 = vpop.permute.xlu1 %753 }
  0xd3   : > { %v772_v40 = vsel %vm197_vm0, %v758_v38, 0  ;;  %v761_v41 = vsel %vm759_vm9, %v756_v37, %v758_v38  ;;  %v760_v42 = vsel %vm759_vm9, %v754_v39, %v756_v37 }
  0xd4   : > { %v769_v43 = vsel %vm197_vm0, %v761_v41, 0  ;;  %807 = vmatpush.bf16.msra.mxu2 %v772_v40  ;;  %v766_v44 = vsel %vm197_vm0, %v760_v42, 0 }
  0xd5   : > { %794 = vmatpush.bf16.msra.mxu1 %v769_v43 }
  0xd8   : > { %915 = vmatmul.msk.bf16.vlgmr.msra.gmra.mxu0 %vm193_vm1, %v913_v15 }
  0xd9   : > { %781 = vmatpush.bf16.msra.mxu0 %v766_v44 }
  0xdd   : > { %924 = vmatmul.msk.bf16.vlgmr.msrb.gmra.mxu3 %vm193_vm1, %v921_v47 }
  0xe0   : > { %922 = vmatmul.msk.bf16.vlgmr.msrb.gmra.mxu1 %vm193_vm1, %v921_v47 }
  0xe2   : > { %923 = vmatmul.msk.bf16.vlgmr.msrb.gmra.mxu2 %vm193_vm1, %v921_v47 }
  0xe8   : > { %920 = vmatmul.msk.bf16.vlgmr.msrb.gmra.mxu0 %vm193_vm1, %v917_v34 }
  0xf0   : > { %927 = vmatmul.msk.bf16.vlgmr.msra.gmra.mxu1 %vm193_vm1, %v925_v48 }
  0xf2   : > { %928 = vmatmul.msk.bf16.vlgmr.msra.gmra.mxu2 %vm193_vm1, %v925_v48 }
  0xf8   : > { %926 = vmatmul.msk.bf16.vlgmr.msra.gmra.mxu0 %vm193_vm1, %v925_v48 }
 0x103   : > { %v820_v50 = vpop.permute.xlu0 %819 }
 0x10d   : > { %v229_v51 = vpop.f32.mrf.mxu1 }
 0x112   : > { %v242_v52 = vpop.f32.mrf.mxu2 }
 0x115   : > { %v216_v53 = vpop.f32.mrf.mxu0  ;;  %v231_v54 = vpop.f32.mrf.mxu1 }
 0x116   : > { %v269_v55 = vadd.f32 %v268_v49, %v216_v53  ;;  %v352_v56 = vpop.f32.mrf.mxu3 }
 0x11a   : > { %v244_v57 = vpop.f32.mrf.mxu2 }
 0x11d   : > { %v218_v58 = vpop.f32.mrf.mxu0  ;;  %v294_v59 = vpop.f32.mrf.mxu1 }
 0x11e   : > { %v295_v60 = vadd.f32 %v294_v59, %v242_v52  ;;  %v354_v61 = vpop.f32.mrf.mxu3 }
 0x125   : > { %v339_v62 = vpop.f32.mrf.mxu2  ;;  %v281_v63 = vpop.f32.mrf.mxu0 }
 0x126   : > { %v369_v0 = vadd.f32 %v339_v62, %v269_v55  ;;  %v282_v1 = vadd.f32 %v281_v63, %v229_v51  ;;  %v296_v2 = vpop.f32.mrf.mxu1 }
 0x128   : > { %v370_v3 = vadd.f32 %v352_v56, %v282_v1 }
 0x12d   : > { %v341_v4 = vpop.f32.mrf.mxu2  ;;  %v283_v5 = vpop.f32.mrf.mxu0 }
 0x12e   : > { %v413_v6 = vpop.f32.mrf.mxu1  ;;  %v439_v7 = vpop.f32.mrf.mxu3 }
 0x12f   : > { %v443_v40 = vadd.f32 %v413_v6, %v369_v0 }
 0x135   : > { %v426_v8 = vpop.f32.mrf.mxu2  ;;  %v365_v9 = vpop.f32.mrf.mxu0 }
 0x136   : > { %v415_v10 = vpop.f32.mrf.mxu1  ;;  %v441_v11 = vpop.f32.mrf.mxu3  ;;  %v444_v32 = vadd.f32 %v426_v8, %v370_v3  ;;  %v371_v36 = vadd.f32 %v365_v9, %v295_v60 }
 0x138   : > { %v445_v41 = vadd.f32 %v439_v7, %v371_v36 }
 0x13d   : > { %v428_v12 = vpop.f32.mrf.mxu2  ;;  %v367_v13 = vpop.f32.mrf.mxu0 }
 0x13e   : > { %v500_v14 = vpop.f32.mrf.mxu1 }
 0x13f   : > { %v518_v33 = vadd.f32 %v500_v14, %v444_v32 }
 0x140   : > { %v561_v15 = vpop.f32.mrf.mxu3 }
 0x145   : > { %v513_v16 = vpop.f32.mrf.mxu2  ;;  %v487_v17 = vpop.f32.mrf.mxu0 }
 0x146   : > { %v502_v18 = vpop.f32.mrf.mxu1  ;;  %v519_v43 = vadd.f32 %v513_v16, %v445_v41  ;;  %v517_v44 = vadd.f32 %v487_v17, %v443_v40 }
 0x148   : > { %v563_v19 = vpop.f32.mrf.mxu3  ;;  %v591_v52 = vadd.f32 %v561_v15, %v517_v44 }
 0x14d   : > { %v515_v20 = vpop.f32.mrf.mxu2  ;;  %v489_v21 = vpop.f32.mrf.mxu0 }
 0x14e   : > { %v587_v22 = vpop.f32.mrf.mxu1 }
 0x14f   : > { %v593_v48 = vadd.f32 %v587_v22, %v519_v43 }
 0x150   : > { %v648_v23 = vpop.f32.mrf.mxu3 }
 0x155   : > { %v635_v24 = vpop.f32.mrf.mxu2  ;;  %v574_v25 = vpop.f32.mrf.mxu0 }
 0x156   : > { %v589_v26 = vpop.f32.mrf.mxu1  ;;  %v592_v38 = vadd.f32 %v574_v25, %v518_v33  ;;  %v665_v55 = vadd.f32 %v635_v24, %v591_v52 }
 0x158   : > { %v650_v27 = vpop.f32.mrf.mxu3  ;;  %v666_v42 = vadd.f32 %v648_v23, %v592_v38 }
 0x15d   : > { %v637_v28 = vpop.f32.mrf.mxu2  ;;  %v576_v29 = vpop.f32.mrf.mxu0 }
 0x15e   : > { %v709_v30 = vpop.f32.mrf.mxu1 }
 0x15f   : > { %v739_v57 = vadd.f32 %v709_v30, %v665_v55 }
 0x160   : > { %v735_v31 = vpop.f32.mrf.mxu3 }
 0x165   : > { %v722_v34 = vpop.f32.mrf.mxu2  ;;  %v661_v35 = vpop.f32.mrf.mxu0 }
 0x166   : > { %v711_v37 = vpop.f32.mrf.mxu1  ;;  %v740_v45 = vadd.f32 %v722_v34, %v666_v42  ;;  %v667_v53 = vadd.f32 %v661_v35, %v593_v48 }
 0x168   : > { %v737_v39 = vpop.f32.mrf.mxu3  ;;  %v741_v58 = vadd.f32 %v735_v31, %v667_v53 }
 0x16d   : > { %v724_v46 = vpop.f32.mrf.mxu2  ;;  %v663_v47 = vpop.f32.mrf.mxu0 }
 0x16e   : > { %v796_v49 = vpop.f32.mrf.mxu1 }
 0x16f   : > { %v814_v51 = vadd.f32 %v796_v49, %v740_v45 }
 0x171   : > { %v823_v54 = vadd.f32 %v820_v50, %v814_v51 }
 0x173   : > { %v826_v56 = vmax.f32 %v823_v54, 0.0 }
 0x175   : > { %829 = vst [vmem:[%s170_s24 + $0x8] sm:$0xff] %v826_v56  ;;  %v809_v59 = vpop.f32.mrf.mxu2  ;;  %v783_v60 = vpop.f32.mrf.mxu0 }
 0x176   : > { %v815_v61 = vadd.f32 %v809_v59, %v741_v58  ;;  %v813_v62 = vadd.f32 %v783_v60, %v739_v57  ;;  %v798_v63 = vpop.f32.mrf.mxu1 }
 0x178   : > { %v824_v0 = vadd.f32 %v820_v50, %v815_v61  ;;  %v822_v1 = vadd.f32 %v820_v50, %v813_v62 }
 0x17a   : > { %v827_v2 = vmax.f32 %v824_v0, 0.0  ;;  %v825_v3 = vmax.f32 %v822_v1, 0.0 }
 0x17c   : > { %831 = vst.msk [vmem:[%s170_s24 + $0x10] sm:$0xff] %vm830_vm10, %v827_v2 }
 0x17d   : > { %828 = vst [vmem:[%s170_s24] sm:$0xff] %v825_v3  ;;  %v785_v4 = vpop.f32.mrf.mxu0  ;;  %v811_v5 = vpop.f32.mrf.mxu2 }
 0x17e PF: > { %s13_s12 = sadd.s32 1, %s957_s12  }
 0x17f   : > { %p10_p4 = scmp.ge.s32.totalorder %s13_s12, 4  }
 0x181   :  { %12 = sbr.rel (!%p10_p4) target bundleno = 1 (0x1), region = 70 }

// kernel: generalized_rcnn_g_forward.4
= control target key start
LH: loop header
LB: loop body
LE: loop exit
PB: predicated region body
PF: predicated region fallthrough
CT: control target
= control target key end

     0   :  { %s671_s12 = smov 0   ;;  %s752_s0 = inlined_call_operand.vmem [shape: bf16[2,4,8,90], index: 0, kind: input, shape index: {}]   ;;  %s753_s1 = inlined_call_operand.vmem [shape: bf16[9,16,8], index: 1, kind: input, shape index: {}]   ;;  %s754_s2 = inlined_call_operand.vmem [shape: f32[16,1], index: 2, kind: input, shape index: {}]   ;;  %s755_s3 = inlined_call_operand.vmem [shape: f32[2,16,72], index: 3, kind: output, shape index: {}]  }
   0x1 LB: > { %s539_s13 = sadd.s32 4294967295, %s645_s12   ;;  %p543_p0 = scmp.ge.s32.totalorder %s645_s12, 1  ;;  %s645_s12 = sphi %s671_s12, %s13_s12  }
   0x2   : > { %p137_p1 = scmp.lt.s32.totalorder %s645_s12, 3 }
   0x4   : > { %p138_p2 = pnand %p543_p0, %p137_p1 }
   0x5   : > { %p161_p3 = scmp.lt.s32.totalorder (!%p138_p2), %s539_s13, 1  ;;  %s647_s22 = smov (!%p138_p2), 127  }
   0x6   : > { %141 = sbr.rel (%p138_p2) target bundleno = 305 (0x131), region = 32  ;;  %s648_s23 = smov (!%p138_p2), 119  }
   0x7   : > { %s649_s24 = smov (!%p138_p2), 118  }
   0xb   : > { %s757_s13 = smov (!%p161_p3, %s539_s13), 1  ;;  %vm189_vm0 = vcmask 1043456   ;;  %v617_v7 = vld [vmem:[%s753_s1 + $0x8] sm:$0xff]  ;;  %vm185_vm1 = vcmask 64512   ;;  %v616_v10 = vld [vmem:[%s753_s1] sm:$0xff]  ;;  %v619_v14 = vld [vmem:[%s753_s1 + $0x18] sm:$0xff] }
   0xc   : > { %s614_s14 = sshll.u32 %s757_s13, 4  ;;  %v620_v17 = vld [vmem:[%s753_s1 + $0x20] sm:$0xff]  ;;  %v466_v21 = vld [vmem:[%s754_s2 + $0x8] sm:$0xff]  ;;  %v650_v23 = vmov 0   ;;  %v618_v27 = vld [vmem:[%s753_s1 + $0x10] sm:$0xff]  ;;  %vm481_vm2 = vcmask 588800  }
   0xd   : > { %s687_s17 = scalar_lea.vmem %s752_s0, %s614_s14  ;;  %v624_v20 = vld [vmem:[%s753_s1 + $0x40] sm:$0xff]  ;;  %638 = vset.pattern.permute.xlu0 %v650_v23  ;;  %637 = vset.pattern.permute.xlu2 %v650_v23  ;;  %v623_v29 = vld [vmem:[%s753_s1 + $0x38] sm:$0xff]  ;;  %v621_v34 = vld [vmem:[%s753_s1 + $0x28] sm:$0xff]  ;;  %s170_s21 = scalar_lea.vmem %s755_s3, %s614_s14 }
   0xe   : > { %v172_v0 = vld [vmem:[%s687_s17] sm:$0xf]  ;;  %v548_v1 = vld [vmem:[%s687_s17 + $0x4] sm:$0xf]  ;;  %v568_v5 = vld [vmem:[%s687_s17 + $0x8] sm:$0xf] }
   0xf   : > { %v241_v2 = vunpack.c.l.b16 %v172_v0  ;;  %v407_v3 = vunpack.c.l.b16 %v548_v1  ;;  %v191_v4 = vsel %vm189_vm0, %v548_v1, 0  ;;  %v216_v6 = vsel %vm189_vm0, %v172_v0, 0  ;;  %v576_v15 = vld [vmem:[%s687_s17 + $0xc] sm:$0xf]  ;;  %v465_v22 = vld [vmem:[%s754_s2] sm:$0xff]  ;;  %v622_v35 = vld [vmem:[%s753_s1 + $0x30] sm:$0xff] }
  0x10   : > { %200 = vmatpush.bf16.msra.mxu0 %v191_v4  ;;  %225 = vmatpush.bf16.msra.mxu1 %v216_v6  ;;  %v340_v11 = vunpack.c.l.b16 %v568_v5  ;;  %v281_v13 = vsel %vm189_vm0, %v568_v5, 0  ;;  %v313_v16 = vsel %vm189_vm0, %v576_v15, 0 }
  0x11   : > { %v242_v8 = vpack.c.b16 %v241_v2, %v241_v2  ;;  %v408_v9 = vpack.c.b16 %v407_v3, %v407_v3  ;;  %290 = vmatpush.bf16.msra.mxu3 %v281_v13 }
  0x12   : > { %v341_v12 = vpack.c.b16 %v340_v11, %v340_v11 }
  0x13   : > { %243 = vrot.lane.b32.xlu0 %v242_v8, %s647_s22  ;;  %409 = vrot.lane.b32.xlu1 %v408_v9, %s648_s23 }
  0x14   : > { %441 = vrot.lane.b32.xlu2 %v242_v8, %s649_s24  ;;  %555 = vmatmul.msk.bf16.vlgmr.msra.gmra.mxu0 %vm185_vm1, %v617_v7 }
  0x15   : > { %560 = vmatmul.msk.bf16.vlgmr.msra.gmra.mxu1 %vm185_vm1, %v616_v10  ;;  %575 = vmatmul.msk.bf16.vlgmr.msra.gmra.mxu3 %vm185_vm1, %v619_v14 }
  0x16   : > { %322 = vmatpush.bf16.msrb.mxu0 %v313_v16 }
  0x1b   : > { %374 = vrot.lane.b32.xlu0 %v242_v8, %s648_s23  ;;  %342 = vrot.lane.b32.xlu1 %v341_v12, %s647_s22 }
  0x1c   : > { %469 = vperm.xlu2 %637, %v465_v22  }
  0x23   : > { %474 = vperm.xlu0 %638, %v466_v21  }
  0x24   : > { %583 = vmatmul.msk.bf16.vlgmr.msrb.gmra.mxu0 %vm185_vm1, %v620_v17 }
  0x6e   : > { %v442_v18 = vpop.permute.xlu2 %441 }
  0x6f   : > { %v447_v19 = vsel %vm189_vm0, %v442_v18, 0 }
  0x70   : > { %456 = vmatpush.bf16.msra.mxu0 %v447_v19 }
  0x73   : > { %611 = vmatmul.msk.bf16.vlgmr.msra.gmra.mxu0 %vm185_vm1, %v624_v20 }
  0x76   : > { %v470_v62 = vpop.permute.xlu2 %469 }
  0x85   : > { %v244_v24 = vpop.permute.xlu0 %243  ;;  %v410_v25 = vpop.permute.xlu1 %409 }
  0x86   : > { %v249_v26 = vsel %vm189_vm0, %v244_v24, 0  ;;  %v415_v28 = vsel %vm189_vm0, %v410_v25, 0 }
  0x87   : > { %258 = vmatpush.bf16.msra.mxu2 %v249_v26  ;;  %424 = vmatpush.bf16.msrb.mxu3 %v415_v28 }
  0x8a   : > { %567 = vmatmul.msk.bf16.vlgmr.msra.gmra.mxu2 %vm185_vm1, %v618_v27  ;;  %604 = vmatmul.msk.bf16.vlgmr.msrb.gmra.mxu3 %vm185_vm1, %v623_v29 }
  0x8d   : > { %v375_v30 = vpop.permute.xlu0 %374  ;;  %v343_v31 = vpop.permute.xlu1 %342 }
  0x8e   : > { %v380_v32 = vsel %vm189_vm0, %v375_v30, 0  ;;  %v348_v33 = vsel %vm189_vm0, %v343_v31, 0 }
  0x8f   : > { %389 = vmatpush.bf16.msrb.mxu2 %v380_v32  ;;  %357 = vmatpush.bf16.msrb.mxu1 %v348_v33 }
  0x91   : > { %v202_v36 = vpop.f32.mrf.mxu0 }
  0x92   : > { %590 = vmatmul.msk.bf16.vlgmr.msrb.gmra.mxu1 %vm185_vm1, %v621_v34  ;;  %v227_v38 = vpop.f32.mrf.mxu1 }
  0x93   : > { %v228_v42 = vadd.f32 %v227_v38, %v202_v36 }
  0x95   : > { %v475_v8 = vpop.permute.xlu0 %474 }
  0x98   : > { %v292_v39 = vpop.f32.mrf.mxu3 }
  0x99   : > { %v204_v37 = vpop.f32.mrf.mxu0 }
  0x9a   : > { %597 = vmatmul.msk.bf16.vlgmr.msrb.gmra.mxu2 %vm185_vm1, %v622_v35  ;;  %v229_v43 = vpop.f32.mrf.mxu1 }
  0x9b   : > { %v230_v49 = vadd.f32 %v229_v43, %v204_v37 }
  0xa0   : > { %v294_v45 = vpop.f32.mrf.mxu3 }
  0xa1   : > { %v324_v40 = vpop.f32.mrf.mxu0 }
  0xa9   : > { %v326_v48 = vpop.f32.mrf.mxu0 }
  0xf0   : > { %v458_v58 = vpop.f32.mrf.mxu0 }
  0xf8   : > { %v460_v7 = vpop.f32.mrf.mxu0 }
 0x10d   : > { %v260_v41 = vpop.f32.mrf.mxu2  ;;  %v426_v55 = vpop.f32.mrf.mxu3 }
 0x10e   : > { %v265_v44 = vadd.f32 %v260_v41, %v228_v42 }
 0x10f   : > { %v359_v50 = vpop.f32.mrf.mxu1 }
 0x110   : > { %v297_v46 = vadd.f32 %v292_v39, %v265_v44 }
 0x112   : > { %v329_v51 = vadd.f32 %v324_v40, %v297_v46 }
 0x114   : > { %v364_v53 = vadd.f32 %v359_v50, %v329_v51 }
 0x115   : > { %v262_v47 = vpop.f32.mrf.mxu2  ;;  %v428_v5 = vpop.f32.mrf.mxu3 }
 0x116   : > { %v266_v52 = vadd.f32 %v262_v47, %v230_v49 }
 0x117   : > { %v361_v61 = vpop.f32.mrf.mxu1 }
 0x118   : > { %v298_v54 = vadd.f32 %v294_v45, %v266_v52 }
 0x11a   : > { %v330_v59 = vadd.f32 %v326_v48, %v298_v54 }
 0x11c   : > { %v365_v0 = vadd.f32 %v361_v61, %v330_v59 }
 0x11d   : > { %v391_v56 = vpop.f32.mrf.mxu2 }
 0x11e   : > { %v396_v57 = vadd.f32 %v391_v56, %v364_v53 }
 0x120   : > { %v431_v60 = vadd.f32 %v426_v55, %v396_v57 }
 0x122   : > { %v463_v63 = vadd.f32 %v458_v58, %v431_v60 }
 0x124   : > { %v477_v1 = vadd.f32 %v470_v62, %v463_v63 }
 0x125   : > { %v393_v2 = vpop.f32.mrf.mxu2 }
 0x126   : > { %v479_v3 = vmax.f32 %v477_v1, 0.0  ;;  %v397_v4 = vadd.f32 %v393_v2, %v365_v0 }
 0x128   : > { %482 = vst.msk [vmem:[%s170_s21] sm:$0xff] %vm481_vm2, %v479_v3  ;;  %v432_v6 = vadd.f32 %v428_v5, %v397_v4 }
 0x12a   : > { %v464_v9 = vadd.f32 %v460_v7, %v432_v6 }
 0x12c   : > { %v478_v10 = vadd.f32 %v475_v8, %v464_v9 }
 0x12e   : > { %v480_v11 = vmax.f32 %v478_v10, 0.0 }
 0x130   : > { %483 = vst.msk [vmem:[%s170_s21 + $0x8] sm:$0xff] %vm481_vm2, %v480_v11 }
 0x131 PF: > { %s13_s12 = sadd.s32 1, %s645_s12  }
 0x132   : > { %p10_p4 = scmp.ge.s32.totalorder %s13_s12, 4  }
 0x134   :  { %12 = sbr.rel (!%p10_p4) target bundleno = 1 (0x1), region = 73 }

// kernel: generalized_rcnn_g_forward.5
= control target key start
LH: loop header
LB: loop body
LE: loop exit
PB: predicated region body
PF: predicated region fallthrough
CT: control target
= control target key end

     0   :  { %s929_s12 = smov 0   ;;  %s1047_s0 = inlined_call_operand.vmem [shape: bf16[2,4,16,30], index: 0, kind: input, shape index: {}]   ;;  %s1048_s1 = inlined_call_operand.vmem [shape: bf16[9,32,16], index: 1, kind: input, shape index: {}]   ;;  %s1049_s2 = inlined_call_operand.vmem [shape: f32[32,1], index: 2, kind: input, shape index: {}]   ;;  %s1050_s3 = inlined_call_operand.vmem [shape: f32[2,32,20], index: 3, kind: output, shape index: {}]  }
   0x1 LB: > { %s702_s13 = sadd.s32 4294967295, %s903_s12   ;;  %p706_p0 = scmp.ge.s32.totalorder %s903_s12, 1  ;;  %s903_s12 = sphi %s929_s12, %s13_s12  }
   0x2   : > { %p137_p1 = scmp.lt.s32.totalorder %s903_s12, 3 }
   0x4   : > { %p138_p2 = pnand %p706_p0, %p137_p1 }
   0x5   : > { %p161_p3 = scmp.lt.s32.totalorder (!%p138_p2), %s702_s13, 1  ;;  %s905_s18 = smov (!%p138_p2), 127  }
   0x6   : > { %141 = sbr.rel (%p138_p2) target bundleno = 332 (0x14c), region = 32  ;;  %s906_s19 = smov (!%p138_p2), 123  }
   0x7   : > { %s907_s22 = smov (!%p138_p2), 122  }
   0xb   : > { %s1052_s13 = smov (!%p161_p3, %s702_s13), 1  ;;  %v864_v2 = vld [vmem:[%s1048_s1 + $0x18] sm:$0xff]  ;;  %vm202_vm0 = vcmask 130048   ;;  %v863_v4 = vld [vmem:[%s1048_s1 + $0x10] sm:$0xff]  ;;  %v860_v5 = vld [vmem:[%s1048_s1] sm:$0xff]  ;;  %v908_v26 = vmov 0  }
   0xc   : > { %s857_s14 = sshll.u32 %s1052_s13, 5  ;;  %v861_v6 = vld [vmem:[%s1048_s1 + $0x8] sm:$0xff]  ;;  %v868_v7 = vld [vmem:[%s1048_s1 + $0x30] sm:$0xff]  ;;  %v871_v9 = vld [vmem:[%s1048_s1 + $0x40] sm:$0xff]  ;;  %895 = vset.pattern.permute.xlu0 %v908_v26  ;;  %896 = vset.pattern.permute.xlu1 %v908_v26  ;;  %vm642_vm1 = vcmask 162816  }
   0xd   : > { %s165_s17 = scalar_lea.vmem %s1047_s0, %s857_s14  ;;  %v869_v11 = vld [vmem:[%s1048_s1 + $0x38] sm:$0xff]  ;;  %v872_v12 = vld [vmem:[%s1048_s1 + $0x48] sm:$0xff]  ;;  %v865_v15 = vld [vmem:[%s1048_s1 + $0x20] sm:$0xff]  ;;  %894 = vset.pattern.permute.xlu2 %v908_v26 }
   0xe   : > { %v859_v0 = vld [vmem:[%s165_s17] sm:$0xff]  ;;  %v862_v1 = vld [vmem:[%s165_s17 + $0x8] sm:$0xff]  ;;  %v867_v3 = vld [vmem:[%s165_s17 + $0x10] sm:$0xff] }
   0xf   : > { %284 = vrot.lane.b32.xlu0 %v859_v0, %s905_s18  ;;  %531 = vrot.lane.b32.xlu1 %v862_v1, %s906_s19  ;;  %v870_v8 = vld [vmem:[%s165_s17 + $0x18] sm:$0xff]  ;;  %v877_v16 = vld [vmem:[%s1048_s1 + $0x70] sm:$0xff] }
  0x10   : > { %578 = vrot.lane.b32.xlu2 %v859_v0, %s907_s22  ;;  %881 = vmatpush.bf16.msra.mxu1 %v862_v1  ;;  %v879_v17 = vld [vmem:[%s1048_s1 + $0x80] sm:$0xff]  ;;  %v873_v20 = vld [vmem:[%s1048_s1 + $0x50] sm:$0xff]  ;;  %v866_v21 = vld [vmem:[%s1048_s1 + $0x28] sm:$0xff] }
  0x11   : > { %216 = vmatpush.bf16.msra.mxu0 %v862_v1  ;;  %353 = vmatpush.bf16.msra.mxu3 %v867_v3  ;;  %v878_v22 = vld [vmem:[%s1048_s1 + $0x78] sm:$0xff]  ;;  %v880_v23 = vld [vmem:[%s1048_s1 + $0x88] sm:$0xff]  ;;  %v612_v25 = vld [vmem:[%s1049_s2 + $0x10] sm:$0xff] }
  0x12   : > { %v611_v24 = vld [vmem:[%s1049_s2 + $0x8] sm:$0xff]  ;;  %v610_v27 = vld [vmem:[%s1049_s2] sm:$0xff]  ;;  %v874_v28 = vld [vmem:[%s1048_s1 + $0x58] sm:$0xff] }
  0x13   : > { %730 = vmatmul.msk.bf16.vlgmr.msra.gmra.mxu1 %vm202_vm0, %v864_v2  ;;  %v613_v29 = vld [vmem:[%s1049_s2 + $0x18] sm:$0xff]  ;;  %v875_v30 = vld [vmem:[%s1048_s1 + $0x60] sm:$0xff]  ;;  %v876_v31 = vld [vmem:[%s1048_s1 + $0x68] sm:$0xff] }
  0x14   : > { %257 = vmatpush.bf16.msrb.mxu1 %v859_v0  ;;  %729 = vmatmul.msk.bf16.vlgmr.msra.gmra.mxu0 %vm202_vm0, %v863_v4 }
  0x15   : > { %777 = vmatmul.msk.bf16.vlgmr.msra.gmra.mxu3 %vm202_vm0, %v868_v7  ;;  %406 = vmatpush.bf16.msrb.mxu0 %v870_v8 }
  0x17   : > { %484 = vrot.lane.b32.xlu0 %v859_v0, %s906_s19  ;;  %437 = vrot.lane.b32.xlu1 %v867_v3, %s905_s18  ;;  %s1034_s19 = scalar_lea.vmem %s1050_s3, %s857_s14 }
  0x18   : > { %616 = vperm.xlu2 %894, %v610_v27  }
  0x1f   : > { %621 = vperm.xlu0 %895, %v611_v24   ;;  %626 = vperm.xlu1 %896, %v612_v25  }
  0x20   : > { %631 = vperm.xlu2 %894, %v613_v29  }
  0x23   : > { %743 = vmatmul.msk.bf16.vlgmr.msrb.gmra.mxu1 %vm202_vm0, %v860_v5 }
  0x24   : > { %797 = vmatmul.msk.bf16.vlgmr.msrb.gmra.mxu0 %vm202_vm0, %v871_v9 }
  0x25   : > { %778 = vmatmul.msk.bf16.gmra.mxu3 %vm202_vm0, %v869_v11 }
  0x33   : > { %744 = vmatmul.msk.bf16.gmra.mxu1 %vm202_vm0, %v861_v6 }
  0x34   : > { %798 = vmatmul.msk.bf16.gmra.mxu0 %vm202_vm0, %v872_v12 }
  0x6a   : > { %v579_v10 = vpop.permute.xlu2 %578 }
  0x6b   : > { %594 = vmatpush.bf16.msra.mxu0 %v579_v10 }
  0x6e   : > { %853 = vmatmul.msk.bf16.vlgmr.msra.gmra.mxu0 %vm202_vm0, %v879_v17 }
  0x72   : > { %v617_v6 = vpop.permute.xlu2 %616 }
  0x7e   : > { %854 = vmatmul.msk.bf16.gmra.mxu0 %vm202_vm0, %v880_v23 }
  0x81   : > { %v285_v13 = vpop.permute.xlu0 %284  ;;  %v532_v14 = vpop.permute.xlu1 %531 }
  0x82   : > { %300 = vmatpush.bf16.msra.mxu2 %v285_v13  ;;  %547 = vmatpush.bf16.msrb.mxu3 %v532_v14 }
  0x85   : > { %757 = vmatmul.msk.bf16.vlgmr.msra.gmra.mxu2 %vm202_vm0, %v865_v15  ;;  %839 = vmatmul.msk.bf16.vlgmr.msrb.gmra.mxu3 %vm202_vm0, %v877_v16 }
  0x89   : > { %v485_v18 = vpop.permute.xlu0 %484  ;;  %v438_v19 = vpop.permute.xlu1 %437 }
  0x8a   : > { %500 = vmatpush.bf16.msrb.mxu2 %v485_v18  ;;  %453 = vmatpush.bf16.msra.mxu1 %v438_v19 }
  0x8d   : > { %811 = vmatmul.msk.bf16.vlgmr.msra.gmra.mxu1 %vm202_vm0, %v873_v20 }
  0x90   : > { %v223_v32 = vpop.f32.mrf.mxu1 }
  0x91   : > { %v218_v33 = vpop.f32.mrf.mxu0 }
  0x95   : > { %758 = vmatmul.msk.bf16.gmra.mxu2 %vm202_vm0, %v866_v21  ;;  %840 = vmatmul.msk.bf16.gmra.mxu3 %vm202_vm0, %v878_v22  ;;  %v622_v21 = vpop.permute.xlu0 %621 }
  0x98   : > { %v225_v34 = vpop.f32.mrf.mxu1  ;;  %v355_v37 = vpop.f32.mrf.mxu3 }
  0x99   : > { %v220_v35 = vpop.f32.mrf.mxu0 }
  0x9d   : > { %812 = vmatmul.msk.bf16.gmra.mxu1 %vm202_vm0, %v874_v28 }
  0xa0   : > { %v259_v36 = vpop.f32.mrf.mxu1  ;;  %v357_v40 = vpop.f32.mrf.mxu3 }
  0xa1   : > { %v408_v38 = vpop.f32.mrf.mxu0  ;;  %v260_v49 = vadd.f32 %v259_v36, %v218_v33 }
  0xa5   : > { %825 = vmatmul.msk.bf16.vlgmr.msrb.gmra.mxu2 %vm202_vm0, %v875_v30 }
  0xa8   : > { %v261_v39 = vpop.f32.mrf.mxu1  ;;  %v360_v45 = vpop.f32.mrf.mxu3 }
  0xa9   : > { %v410_v42 = vpop.f32.mrf.mxu0  ;;  %v262_v56 = vadd.f32 %v261_v39, %v220_v35 }
  0xb0   : > { %v264_v43 = vpop.f32.mrf.mxu1  ;;  %v362_v50 = vpop.f32.mrf.mxu3 }
  0xb1   : > { %v413_v46 = vpop.f32.mrf.mxu0  ;;  %v265_v1 = vadd.f32 %v264_v43, %v223_v32 }
  0xb5   : > { %826 = vmatmul.msk.bf16.gmra.mxu2 %vm202_vm0, %v876_v31 }
  0xb8   : > { %v266_v47 = vpop.f32.mrf.mxu1 }
  0xb9   : > { %v415_v52 = vpop.f32.mrf.mxu0  ;;  %v267_v14 = vadd.f32 %v266_v47, %v225_v34  ;;  %v627_v34 = vpop.permute.xlu1 %626 }
  0xeb   : > { %v596_v60 = vpop.f32.mrf.mxu0 }
  0xf3   : > { %v598_v13 = vpop.f32.mrf.mxu0 }
  0xfb   : > { %v601_v30 = vpop.f32.mrf.mxu0 }
 0x103   : > { %v603_v43 = vpop.f32.mrf.mxu0 }
 0x108   : > { %v302_v41 = vpop.f32.mrf.mxu2  ;;  %v549_v59 = vpop.f32.mrf.mxu3 }
 0x109   : > { %v312_v51 = vadd.f32 %v302_v41, %v260_v49 }
 0x10a   : > { %v455_v53 = vpop.f32.mrf.mxu1 }
 0x10b   : > { %v365_v54 = vadd.f32 %v355_v37, %v312_v51 }
 0x10d   : > { %v418_v57 = vadd.f32 %v408_v38, %v365_v54 }
 0x10f   : > { %v465_v61 = vadd.f32 %v455_v53, %v418_v57 }
 0x110   : > { %v304_v44 = vpop.f32.mrf.mxu2  ;;  %v551_v8 = vpop.f32.mrf.mxu3 }
 0x111   : > { %v313_v58 = vadd.f32 %v304_v44, %v262_v56 }
 0x112   : > { %v457_v63 = vpop.f32.mrf.mxu1 }
 0x113   : > { %v366_v62 = vadd.f32 %v357_v40, %v313_v58 }
 0x115   : > { %v419_v3 = vadd.f32 %v410_v42, %v366_v62 }
 0x117   : > { %v466_v9 = vadd.f32 %v457_v63, %v419_v3 }
 0x118   : > { %v307_v48 = vpop.f32.mrf.mxu2  ;;  %v554_v26 = vpop.f32.mrf.mxu3 }
 0x119   : > { %v314_v4 = vadd.f32 %v307_v48, %v265_v1 }
 0x11a   : > { %v460_v17 = vpop.f32.mrf.mxu1 }
 0x11b   : > { %v367_v10 = vadd.f32 %v360_v45, %v314_v4  ;;  %v632_v45 = vpop.permute.xlu2 %631 }
 0x11d   : > { %v420_v18 = vadd.f32 %v413_v46, %v367_v10 }
 0x11f   : > { %v467_v23 = vadd.f32 %v460_v17, %v420_v18 }
 0x120   : > { %v309_v55 = vpop.f32.mrf.mxu2  ;;  %v556_v41 = vpop.f32.mrf.mxu3 }
 0x121   : > { %v315_v19 = vadd.f32 %v309_v55, %v267_v14 }
 0x122   : > { %v462_v33 = vpop.f32.mrf.mxu1 }
 0x123   : > { %v368_v24 = vadd.f32 %v362_v50, %v315_v19 }
 0x125   : > { %v421_v31 = vadd.f32 %v415_v52, %v368_v24 }
 0x127   : > { %v468_v36 = vadd.f32 %v462_v33, %v421_v31 }
 0x128   : > { %v502_v0 = vpop.f32.mrf.mxu2 }
 0x129   : > { %v512_v2 = vadd.f32 %v502_v0, %v465_v61 }
 0x12b   : > { %v559_v5 = vadd.f32 %v549_v59, %v512_v2 }
 0x12d   : > { %v606_v7 = vadd.f32 %v596_v60, %v559_v5 }
 0x12f   : > { %v634_v11 = vadd.f32 %v617_v6, %v606_v7 }
 0x130   : > { %v504_v12 = vpop.f32.mrf.mxu2 }
 0x131   : > { %v638_v15 = vmax.f32 %v634_v11, 0.0  ;;  %v513_v16 = vadd.f32 %v504_v12, %v466_v9 }
 0x133   : > { %643 = vst.msk [vmem:[%s1034_s19] sm:$0xff] %vm642_vm1, %v638_v15  ;;  %v560_v20 = vadd.f32 %v551_v8, %v513_v16 }
 0x135   : > { %v607_v22 = vadd.f32 %v598_v13, %v560_v20 }
 0x137   : > { %v635_v25 = vadd.f32 %v622_v21, %v607_v22 }
 0x138   : > { %v507_v27 = vpop.f32.mrf.mxu2 }
 0x139   : > { %v639_v28 = vmax.f32 %v635_v25, 0.0  ;;  %v514_v29 = vadd.f32 %v507_v27, %v467_v23 }
 0x13b   : > { %644 = vst.msk [vmem:[%s1034_s19 + $0x8] sm:$0xff] %vm642_vm1, %v639_v28  ;;  %v561_v32 = vadd.f32 %v554_v26, %v514_v29 }
 0x13d   : > { %v608_v35 = vadd.f32 %v601_v30, %v561_v32 }
 0x13f   : > { %v636_v37 = vadd.f32 %v627_v34, %v608_v35 }
 0x140   : > { %v509_v38 = vpop.f32.mrf.mxu2 }
 0x141   : > { %v640_v39 = vmax.f32 %v636_v37, 0.0  ;;  %v515_v40 = vadd.f32 %v509_v38, %v468_v36 }
 0x143   : > { %645 = vst.msk [vmem:[%s1034_s19 + $0x10] sm:$0xff] %vm642_vm1, %v640_v39  ;;  %v562_v42 = vadd.f32 %v556_v41, %v515_v40 }
 0x145   : > { %v609_v44 = vadd.f32 %v603_v43, %v562_v42 }
 0x147   : > { %v637_v46 = vadd.f32 %v632_v45, %v609_v44 }
 0x149   : > { %v641_v47 = vmax.f32 %v637_v46, 0.0 }
 0x14b   : > { %646 = vst.msk [vmem:[%s1034_s19 + $0x18] sm:$0xff] %vm642_vm1, %v641_v47 }
 0x14c PF: > { %s13_s12 = sadd.s32 1, %s903_s12  }
 0x14d   : > { %p10_p4 = scmp.ge.s32.totalorder %s13_s12, 4  }
 0x14f   :  { %12 = sbr.rel (!%p10_p4) target bundleno = 1 (0x1), region = 73 }

</bundles_post_ra>
